<compile_context>
chip_gen: v7x
topology: tpu7x:2x2x1
jax: 0.10.0
libtpu: 0.0.40
codegen_flags: <defaults>
</compile_context>

<pallas_src>
import math

import jax
import jax.numpy as jnp
from jax import lax
from jax.experimental import pallas as pl
from jax.experimental.pallas import tpu as pltpu


def _fft_decomp_kernel(x_ref, wbr_ref, wbi_ref, p_ref, o_ref, ysr_ref, ysi_ref):
    """Block shapes:
      x_ref  : (tk, Bb, 2C) bf16  -- [Re | Im] of rfft(x), this freq chunk / batch block
      wbr_ref: (tk, C, 2C)  bf16  -- per-frequency [W_re | -W_im], (out, in) layout
      wbi_ref: (tk, C, 2C)  bf16  -- per-frequency [W_im |  W_re], (out, in) layout
      p_ref  : (2, N, Tp)   f32   -- softmax(concat_w) * irfft cos / sin basis
      o_ref  : (Bb, N, C)   f32
      ysr/ysi: (Tp, Bb, C)  f32 scratch -- Re/Im of all per-frequency linear outputs
    """
    k = pl.program_id(1)
    tk = x_ref.shape[0]
    bb = o_ref.shape[0]

    # Stage 1: per-frequency complex linear, batched over the frequency chunk with the
    # whole batch block in the MXU M dimension:
    #   y[f, b, o] = sum_i x[f, b, i] * w[f, o, i]      (i runs over [Re | Im] x C)
    dn = (((2,), (2,)), ((0,), (0,)))      # contract the 2C dim, batch over frequencies
    x = x_ref[...]
    yr = lax.dot_general(x, wbr_ref[...], dn, preferred_element_type=jnp.float32)
    yi = lax.dot_general(x, wbi_ref[...], dn, preferred_element_type=jnp.float32)
    off = pl.multiple_of(k * tk, tk)
    ysr_ref[pl.ds(off, tk), :, :] = yr
    ysi_ref[pl.ds(off, tk), :, :] = yi

    # Stage 2 (last frequency chunk only): fused single-bin irfft + learnable
    # concatenation. One (N, Tp) x (Tp, C) matmul pair per batch row, written to a
    # lane-dense (.., N, C) output block.
    @pl.when(k == pl.num_programs(1) - 1)
    def _():
        p_cos = p_ref[0]                   # (N, Tp)
        p_sin = p_ref[1]                   # (N, Tp)
        for b in range(bb):                # small static loop; M of these dots is N
            out_b = jnp.dot(p_cos, ysr_ref[:, b, :],
                            preferred_element_type=jnp.float32)
            out_b += jnp.dot(p_sin, ysi_ref[:, b, :],
                             preferred_element_type=jnp.float32)
            o_ref[b] = out_b.astype(o_ref.dtype)


def fft_for_decomp(x, w_real, w_imag, concat_w, *, block_b=8, block_t=8):
    """Forward pass of FFT_for_Decomp.

    x            : (B, L, C) float32.
    w_real/w_imag: (t, C, C) = Re/Im of nn.Linear(C, C, complex64, bias=False).weight
                   in PyTorch (out_features, in_features) layout, t = L // 2 + 1.
    concat_w     : (t,) float32 pre-softmax concat coefficients.
    Returns      : (B, 2 * (t - 1), C) float32  (torch.fft.irfft default output length;
                   equals (B, L, C) for even L).
    block_b / block_t tune the batch block (MXU M) and the streamed frequency chunk.
    """
    B, L, C = x.shape

    # TODO(synk): rfft itself has no Pallas/Mosaic primitive; computed with XLA as glue.
    xf = jnp.fft.rfft(x.astype(jnp.float32), axis=1, norm="ortho")    # (B, t, C) c64
    t = xf.shape[1]
    N = 2 * (t - 1)
    assert w_real.shape == (t, C, C) and w_imag.shape == (t, C, C)
    assert concat_w.shape == (t,)

    # --- tiling: frequency chunks (weight streaming) and batch blocks (MXU M dim). ---
    nt = -(-t // block_t)                 # number of frequency chunks
    tk = -(-t // nt)                      # frequencies per chunk (balanced)
    t_pad = tk * nt
    if B <= block_b:
        bb = B                            # full batch -> block == array dim (legal)
    else:
        bb = -(-block_b // 8) * 8         # batch block = multiple of 8 sublanes
    nb = -(-B // bb)
    b_pad = nb * bb

    # --- activations: [Re | Im] stacked on the channel dim, frequency-major, bf16. ---
    xs = jnp.concatenate([jnp.real(xf), jnp.imag(xf)], axis=-1)       # (B, t, 2C)
    xs = jnp.transpose(xs, (1, 0, 2))                                 # (t, B, 2C)
    xs = jnp.pad(xs, ((0, t_pad - t), (0, b_pad - B), (0, 0)))
    xs = xs.astype(jnp.bfloat16)

    # --- fused complex weights, native (out, in) layout (no transpose):
    #     y_re = x_re @ W_re^T - x_im @ W_im^T   -> rows of [W_re | -W_im]
    #     y_im = x_re @ W_im^T + x_im @ W_re^T   -> rows of [W_im |  W_re]
    wbr = jnp.concatenate([w_real, -w_imag], axis=2)                  # (t, C, 2C)
    wbi = jnp.concatenate([w_imag, w_real], axis=2)                   # (t, C, 2C)
    wbr = jnp.pad(wbr, ((0, t_pad - t), (0, 0), (0, 0))).astype(jnp.bfloat16)
    wbi = jnp.pad(wbi, ((0, t_pad - t), (0, 0), (0, 0))).astype(jnp.bfloat16)

    # --- fused projection: irfft(norm='ortho') of a single-bin spectrum
    #     sig_i(n) = s_i * (Re(y_i) cos(2*pi*i*n/N) - Im(y_i) sin(2*pi*i*n/N)),
    #     s_i = 2/sqrt(N) except 1/sqrt(N) at DC / Nyquist (whose Im parts are dropped),
    #     weighted by softmax(concat_w) over frequencies. ---
    kk = jnp.arange(t, dtype=jnp.float32)[:, None]
    nn = jnp.arange(N, dtype=jnp.float32)[None, :]
    ang = 2.0 * jnp.pi * kk * nn / float(N)
    scale = jnp.full((t,), 2.0 / math.sqrt(N), dtype=jnp.float32)
    scale = scale.at[0].set(1.0 / math.sqrt(N)).at[t - 1].set(1.0 / math.sqrt(N))
    b_cos = scale[:, None] * jnp.cos(ang)                             # (t, N)
    b_sin = -scale[:, None] * jnp.sin(ang)
    b_sin = b_sin.at[0, :].set(0.0).at[t - 1, :].set(0.0)             # drop Im DC/Nyq
    w_soft = jax.nn.softmax(concat_w.astype(jnp.float32))
    p_cos = (w_soft[:, None] * b_cos).T                               # (N, t)
    p_sin = (w_soft[:, None] * b_sin).T                               # (N, t)
    proj = jnp.stack([p_cos, p_sin], axis=0)                          # (2, N, t)
    proj = jnp.pad(proj, ((0, 0), (0, 0), (0, t_pad - t)))            # (2, N, t_pad)

    out = pl.pallas_call(
        _fft_decomp_kernel,
        out_shape=jax.ShapeDtypeStruct((b_pad, N, C), jnp.float32),
        grid_spec=pltpu.PrefetchScalarGridSpec(
            num_scalar_prefetch=0,
            grid=(nb, nt),                         # (batch blocks, frequency chunks)
            in_specs=[
                pl.BlockSpec((tk, bb, 2 * C), lambda b, k: (k, b, 0)),   # x [Re|Im]
                pl.BlockSpec((tk, C, 2 * C), lambda b, k: (k, 0, 0)),    # [W_re|-W_im]
                pl.BlockSpec((tk, C, 2 * C), lambda b, k: (k, 0, 0)),    # [W_im| W_re]
                pl.BlockSpec((2, N, t_pad), lambda b, k: (0, 0, 0)),     # projection
            ],
            out_specs=pl.BlockSpec((bb, N, C), lambda b, k: (b, 0, 0)),
            scratch_shapes=[pltpu.VMEM((t_pad, bb, C), jnp.float32),
                            pltpu.VMEM((t_pad, bb, C), jnp.float32)],
        ),
        compiler_params=pltpu.CompilerParams(
            dimension_semantics=("parallel", "arbitrary"),
            vmem_limit_bytes=64 * 1024 * 1024),
    )(xs, wbr, wbi, proj)
    return out[:B]


def reference(x, w_real, w_imag, concat_w):
    """Pure-JAX mirror of the PyTorch forward (matmuls at HIGHEST precision)."""
    hi = lax.Precision.HIGHEST
    xf = jnp.fft.rfft(x.astype(jnp.float32), axis=1, norm="ortho")      # (B, t, C)
    B, t, C = xf.shape
    xf4 = jnp.broadcast_to(xf[:, None, :, :], (B, t, t, C))             # unsqueeze+repeat
    mask = jnp.eye(t, dtype=xf.dtype)
    fre = jnp.einsum("btlc,tl->btlc", xf4, mask, precision=hi)
    W = (w_real + 1j * w_imag).astype(jnp.complex64)                    # (t, Cout, Cin)
    idx = jnp.arange(t)
    diag_in = fre[:, idx, idx, :]                                       # (B, t, C)
    diag_out = jnp.einsum("bic,idc->bid", diag_in, W, precision=hi)     # linear_layers[i]
    fre = fre.at[:, idx, idx, :].set(diag_out)
    enc = jnp.fft.irfft(fre, axis=2, norm="ortho")                      # (B, t, N, C)
    w_soft = jax.nn.softmax(concat_w.astype(jnp.float32))
    return jnp.einsum("btlc,t->blc", enc, w_soft, precision=hi)         # (B, N, C)


if __name__ == "__main__":
    # Small shapes consistent with the module: four_l must equal L // 2 + 1.
    B, L, C = 4, 16, 128
    t = L // 2 + 1

    key = jax.random.PRNGKey(0)
    kx, kwr, kwi, kc = jax.random.split(key, 4)
    x = jax.random.normal(kx, (B, L, C), dtype=jnp.float32)
    w_real = jax.random.normal(kwr, (t, C, C), dtype=jnp.float32) / math.sqrt(C)
    w_imag = jax.random.normal(kwi, (t, C, C), dtype=jnp.float32) / math.sqrt(C)
    concat_w = jax.random.normal(kc, (t,), dtype=jnp.float32)

    out = jax.block_until_ready(fft_for_decomp(x, w_real, w_imag, concat_w))
    assert out.shape == (B, L, C), out.shape
    assert out.dtype == jnp.float32

    ref = jax.block_until_ready(reference(x, w_real, w_imag, concat_w))
    err = float(jnp.max(jnp.abs(out - ref)))
    denom = float(jnp.max(jnp.abs(ref))) + 1e-6
    assert err / denom < 2e-2, f"relative max error too large: {err / denom}"

    print("KERNEL_OK")
</pallas_src>

<mosaic_0001>
module attributes {stable_mosaic.version = 11 : i64} {
  func.func @_fft_decomp_kernel(%arg0: i32, %arg1: i32, %arg2: memref<5x4x256xbf16, #tpu.memory_space<vmem>>, %arg3: memref<5x128x256xbf16, #tpu.memory_space<vmem>>, %arg4: memref<5x128x256xbf16, #tpu.memory_space<vmem>>, %arg5: memref<2x16x10xf32, #tpu.memory_space<vmem>>, %arg6: memref<4x16x128xf32, #tpu.memory_space<vmem>>, %arg7: memref<10x4x128xf32, #tpu.memory_space<vmem>>, %arg8: memref<10x4x128xf32, #tpu.memory_space<vmem>>) attributes {dimension_semantics = [#tpu.dimension_semantics<parallel>, #tpu.dimension_semantics<arbitrary>], iteration_bounds = array<i64: 1, 2>, scalar_prefetch = 0 : i64, scratch_operands = 2 : i64, tpu.core_type = #tpu.core_type<tc>, window_params = [{transform_indices = @transform_0, window_bounds = array<i64: 5, 4, 256>}, {transform_indices = @transform_1, window_bounds = array<i64: 5, 128, 256>}, {transform_indices = @transform_2, window_bounds = array<i64: 5, 128, 256>}, {pipeline_mode = #tpu.pipeline_mode<synchronous>, transform_indices = @transform_3, window_bounds = array<i64: 2, 16, 10>}, {transform_indices = @transform_4, window_bounds = array<i64: 4, 16, 128>}]} {
    %c0 = arith.constant 0 : index
    %c0_0 = arith.constant 0 : index
    %c0_1 = arith.constant 0 : index
    %0 = vector.load %arg2[%c0, %c0_0, %c0_1] : memref<5x4x256xbf16, #tpu.memory_space<vmem>>, vector<5x4x256xbf16>
    %c0_2 = arith.constant 0 : index
    %c0_3 = arith.constant 0 : index
    %c0_4 = arith.constant 0 : index
    %1 = vector.load %arg3[%c0_2, %c0_3, %c0_4] : memref<5x128x256xbf16, #tpu.memory_space<vmem>>, vector<5x128x256xbf16>
    %cst = arith.constant dense<0.000000e+00> : vector<5x4x128xf32>
    %2 = tpu.matmul %0, %1, %cst {dimension_numbers = #tpu.dot_dimension_numbers<[2], [2], [1], [1], [0, 0, 0, 1, 1, 1], [0], [0]>} : vector<5x4x256xbf16>, vector<5x128x256xbf16>, vector<5x4x128xf32> -> vector<5x4x128xf32>
    %c0_5 = arith.constant 0 : index
    %c0_6 = arith.constant 0 : index
    %c0_7 = arith.constant 0 : index
    %3 = vector.load %arg4[%c0_5, %c0_6, %c0_7] : memref<5x128x256xbf16, #tpu.memory_space<vmem>>, vector<5x128x256xbf16>
    %cst_8 = arith.constant dense<0.000000e+00> : vector<5x4x128xf32>
    %4 = tpu.matmul %0, %3, %cst_8 {dimension_numbers = #tpu.dot_dimension_numbers<[2], [2], [1], [1], [0, 0, 0, 1, 1, 1], [0], [0]>} : vector<5x4x256xbf16>, vector<5x128x256xbf16>, vector<5x4x128xf32> -> vector<5x4x128xf32>
    %c5_i32 = arith.constant 5 : i32
    %5 = arith.muli %arg1, %c5_i32 : i32
    %6 = tpu.assume_multiple %5, 5 : i32
    %7 = arith.index_cast %6 : i32 to index
    %c0_9 = arith.constant 0 : index
    %c0_10 = arith.constant 0 : index
    %8 = vector.load %arg7[%7, %c0_9, %c0_10] : memref<10x4x128xf32, #tpu.memory_space<vmem>>, vector<5x4x128xf32>
    tpu.vector_store %arg7[%7, %c0_9, %c0_10], %2 {strides = array<i32>} : memref<10x4x128xf32, #tpu.memory_space<vmem>>, vector<5x4x128xf32>,
    %9 = arith.index_cast %6 : i32 to index
    %c0_11 = arith.constant 0 : index
    %c0_12 = arith.constant 0 : index
    %10 = vector.load %arg8[%9, %c0_11, %c0_12] : memref<10x4x128xf32, #tpu.memory_space<vmem>>, vector<5x4x128xf32>
    tpu.vector_store %arg8[%9, %c0_11, %c0_12], %4 {strides = array<i32>} : memref<10x4x128xf32, #tpu.memory_space<vmem>>, vector<5x4x128xf32>,
    %c1_i32 = arith.constant 1 : i32
    %11 = arith.cmpi eq, %arg1, %c1_i32 : i32
    %12 = arith.extui %11 : i1 to i32
    %c0_i32 = arith.constant 0 : i32
    %13 = arith.cmpi ne, %12, %c0_i32 : i32
    scf.if %13 {
      %c0_13 = arith.constant 0 : index
      %c0_14 = arith.constant 0 : index
      %c0_15 = arith.constant 0 : index
      %14 = vector.load %arg5[%c0_13, %c0_14, %c0_15] : memref<2x16x10xf32, #tpu.memory_space<vmem>>, vector<1x16x10xf32>
      %15 = vector.shape_cast %14 : vector<1x16x10xf32> to vector<16x10xf32>
      %c1 = arith.constant 1 : index
      %c0_16 = arith.constant 0 : index
      %c0_17 = arith.constant 0 : index
      %16 = vector.load %arg5[%c1, %c0_16, %c0_17] : memref<2x16x10xf32, #tpu.memory_space<vmem>>, vector<1x16x10xf32>
      %17 = vector.shape_cast %16 : vector<1x16x10xf32> to vector<16x10xf32>
      %c0_18 = arith.constant 0 : index
      %c0_19 = arith.constant 0 : index
      %c0_20 = arith.constant 0 : index
      %18 = vector.load %arg7[%c0_18, %c0_19, %c0_20] : memref<10x4x128xf32, #tpu.memory_space<vmem>>, vector<10x1x128xf32>
      %19 = vector.shape_cast %18 : vector<10x1x128xf32> to vector<10x128xf32>
      %cst_21 = arith.constant dense<0.000000e+00> : vector<16x128xf32>
      %20 = tpu.matmul %15, %19, %cst_21 {dimension_numbers = #tpu.dot_dimension_numbers<[1], [0], [0], [1], [0, 0, 1, 1], [], []>} : vector<16x10xf32>, vector<10x128xf32>, vector<16x128xf32> -> vector<16x128xf32>
      %c0_22 = arith.constant 0 : index
      %c0_23 = arith.constant 0 : index
      %c0_24 = arith.constant 0 : index
      %21 = vector.load %arg8[%c0_22, %c0_23, %c0_24] : memref<10x4x128xf32, #tpu.memory_space<vmem>>, vector<10x1x128xf32>
      %22 = vector.shape_cast %21 : vector<10x1x128xf32> to vector<10x128xf32>
      %cst_25 = arith.constant dense<0.000000e+00> : vector<16x128xf32>
      %23 = tpu.matmul %17, %22, %cst_25 {dimension_numbers = #tpu.dot_dimension_numbers<[1], [0], [0], [1], [0, 0, 1, 1], [], []>} : vector<16x10xf32>, vector<10x128xf32>, vector<16x128xf32> -> vector<16x128xf32>
      %24 = arith.addf %20, %23 : vector<16x128xf32>
      %c0_26 = arith.constant 0 : index
      %c0_27 = arith.constant 0 : index
      %c0_28 = arith.constant 0 : index
      %25 = vector.load %arg6[%c0_26, %c0_27, %c0_28] : memref<4x16x128xf32, #tpu.memory_space<vmem>>, vector<1x16x128xf32>
      %26 = vector.shape_cast %25 : vector<1x16x128xf32> to vector<16x128xf32>
      %27 = vector.shape_cast %24 : vector<16x128xf32> to vector<1x16x128xf32>
      tpu.vector_store %arg6[%c0_26, %c0_27, %c0_28], %27 {strides = array<i32>} : memref<4x16x128xf32, #tpu.memory_space<vmem>>, vector<1x16x128xf32>,
      %c0_29 = arith.constant 0 : index
      %c1_30 = arith.constant 1 : index
      %c0_31 = arith.constant 0 : index
      %28 = vector.load %arg7[%c0_29, %c1_30, %c0_31] : memref<10x4x128xf32, #tpu.memory_space<vmem>>, vector<10x1x128xf32>
      %29 = vector.shape_cast %28 : vector<10x1x128xf32> to vector<10x128xf32>
      %cst_32 = arith.constant dense<0.000000e+00> : vector<16x128xf32>
      %30 = tpu.matmul %15, %29, %cst_32 {dimension_numbers = #tpu.dot_dimension_numbers<[1], [0], [0], [1], [0, 0, 1, 1], [], []>} : vector<16x10xf32>, vector<10x128xf32>, vector<16x128xf32> -> vector<16x128xf32>
      %c0_33 = arith.constant 0 : index
      %c1_34 = arith.constant 1 : index
      %c0_35 = arith.constant 0 : index
      %31 = vector.load %arg8[%c0_33, %c1_34, %c0_35] : memref<10x4x128xf32, #tpu.memory_space<vmem>>, vector<10x1x128xf32>
      %32 = vector.shape_cast %31 : vector<10x1x128xf32> to vector<10x128xf32>
      %cst_36 = arith.constant dense<0.000000e+00> : vector<16x128xf32>
      %33 = tpu.matmul %17, %32, %cst_36 {dimension_numbers = #tpu.dot_dimension_numbers<[1], [0], [0], [1], [0, 0, 1, 1], [], []>} : vector<16x10xf32>, vector<10x128xf32>, vector<16x128xf32> -> vector<16x128xf32>
      %34 = arith.addf %30, %33 : vector<16x128xf32>
      %c1_37 = arith.constant 1 : index
      %c0_38 = arith.constant 0 : index
      %c0_39 = arith.constant 0 : index
      %35 = vector.load %arg6[%c1_37, %c0_38, %c0_39] : memref<4x16x128xf32, #tpu.memory_space<vmem>>, vector<1x16x128xf32>
      %36 = vector.shape_cast %35 : vector<1x16x128xf32> to vector<16x128xf32>
      %37 = vector.shape_cast %34 : vector<16x128xf32> to vector<1x16x128xf32>
      tpu.vector_store %arg6[%c1_37, %c0_38, %c0_39], %37 {strides = array<i32>} : memref<4x16x128xf32, #tpu.memory_space<vmem>>, vector<1x16x128xf32>,
      %c0_40 = arith.constant 0 : index
      %c2 = arith.constant 2 : index
      %c0_41 = arith.constant 0 : index
      %38 = vector.load %arg7[%c0_40, %c2, %c0_41] : memref<10x4x128xf32, #tpu.memory_space<vmem>>, vector<10x1x128xf32>
      %39 = vector.shape_cast %38 : vector<10x1x128xf32> to vector<10x128xf32>
      %cst_42 = arith.constant dense<0.000000e+00> : vector<16x128xf32>
      %40 = tpu.matmul %15, %39, %cst_42 {dimension_numbers = #tpu.dot_dimension_numbers<[1], [0], [0], [1], [0, 0, 1, 1], [], []>} : vector<16x10xf32>, vector<10x128xf32>, vector<16x128xf32> -> vector<16x128xf32>
      %c0_43 = arith.constant 0 : index
      %c2_44 = arith.constant 2 : index
      %c0_45 = arith.constant 0 : index
      %41 = vector.load %arg8[%c0_43, %c2_44, %c0_45] : memref<10x4x128xf32, #tpu.memory_space<vmem>>, vector<10x1x128xf32>
      %42 = vector.shape_cast %41 : vector<10x1x128xf32> to vector<10x128xf32>
      %cst_46 = arith.constant dense<0.000000e+00> : vector<16x128xf32>
      %43 = tpu.matmul %17, %42, %cst_46 {dimension_numbers = #tpu.dot_dimension_numbers<[1], [0], [0], [1], [0, 0, 1, 1], [], []>} : vector<16x10xf32>, vector<10x128xf32>, vector<16x128xf32> -> vector<16x128xf32>
      %44 = arith.addf %40, %43 : vector<16x128xf32>
      %c2_47 = arith.constant 2 : index
      %c0_48 = arith.constant 0 : index
      %c0_49 = arith.constant 0 : index
      %45 = vector.load %arg6[%c2_47, %c0_48, %c0_49] : memref<4x16x128xf32, #tpu.memory_space<vmem>>, vector<1x16x128xf32>
      %46 = vector.shape_cast %45 : vector<1x16x128xf32> to vector<16x128xf32>
      %47 = vector.shape_cast %44 : vector<16x128xf32> to vector<1x16x128xf32>
      tpu.vector_store %arg6[%c2_47, %c0_48, %c0_49], %47 {strides = array<i32>} : memref<4x16x128xf32, #tpu.memory_space<vmem>>, vector<1x16x128xf32>,
      %c0_50 = arith.constant 0 : index
      %c3 = arith.constant 3 : index
      %c0_51 = arith.constant 0 : index
      %48 = vector.load %arg7[%c0_50, %c3, %c0_51] : memref<10x4x128xf32, #tpu.memory_space<vmem>>, vector<10x1x128xf32>
      %49 = vector.shape_cast %48 : vector<10x1x128xf32> to vector<10x128xf32>
      %cst_52 = arith.constant dense<0.000000e+00> : vector<16x128xf32>
      %50 = tpu.matmul %15, %49, %cst_52 {dimension_numbers = #tpu.dot_dimension_numbers<[1], [0], [0], [1], [0, 0, 1, 1], [], []>} : vector<16x10xf32>, vector<10x128xf32>, vector<16x128xf32> -> vector<16x128xf32>
      %c0_53 = arith.constant 0 : index
      %c3_54 = arith.constant 3 : index
      %c0_55 = arith.constant 0 : index
      %51 = vector.load %arg8[%c0_53, %c3_54, %c0_55] : memref<10x4x128xf32, #tpu.memory_space<vmem>>, vector<10x1x128xf32>
      %52 = vector.shape_cast %51 : vector<10x1x128xf32> to vector<10x128xf32>
      %cst_56 = arith.constant dense<0.000000e+00> : vector<16x128xf32>
      %53 = tpu.matmul %17, %52, %cst_56 {dimension_numbers = #tpu.dot_dimension_numbers<[1], [0], [0], [1], [0, 0, 1, 1], [], []>} : vector<16x10xf32>, vector<10x128xf32>, vector<16x128xf32> -> vector<16x128xf32>
      %54 = arith.addf %50, %53 : vector<16x128xf32>
      %c3_57 = arith.constant 3 : index
      %c0_58 = arith.constant 0 : index
      %c0_59 = arith.constant 0 : index
      %55 = vector.load %arg6[%c3_57, %c0_58, %c0_59] : memref<4x16x128xf32, #tpu.memory_space<vmem>>, vector<1x16x128xf32>
      %56 = vector.shape_cast %55 : vector<1x16x128xf32> to vector<16x128xf32>
      %57 = vector.shape_cast %54 : vector<16x128xf32> to vector<1x16x128xf32>
      tpu.vector_store %arg6[%c3_57, %c0_58, %c0_59], %57 {strides = array<i32>} : memref<4x16x128xf32, #tpu.memory_space<vmem>>, vector<1x16x128xf32>,
    } else {
    }
    return
  }
  func.func @transform_0(%arg0: i32, %arg1: i32) -> (i32, i32, i32) {
    %c0_i32 = arith.constant 0 : i32
    %c0_i32_0 = arith.constant 0 : i32
    return %arg1, %arg0, %c0_i32 : i32, i32, i32
  }
  func.func @transform_1(%arg0: i32, %arg1: i32) -> (i32, i32, i32) {
    %c0_i32 = arith.constant 0 : i32
    %c0_i32_0 = arith.constant 0 : i32
    %c0_i32_1 = arith.constant 0 : i32
    return %arg1, %c0_i32, %c0_i32_0 : i32, i32, i32
  }
  func.func @transform_2(%arg0: i32, %arg1: i32) -> (i32, i32, i32) {
    %c0_i32 = arith.constant 0 : i32
    %c0_i32_0 = arith.constant 0 : i32
    %c0_i32_1 = arith.constant 0 : i32
    return %arg1, %c0_i32, %c0_i32_0 : i32, i32, i32
  }
  func.func @transform_3(%arg0: i32, %arg1: i32) -> (i32, i32, i32) {
    %c0_i32 = arith.constant 0 : i32
    %c0_i32_0 = arith.constant 0 : i32
    %c0_i32_1 = arith.constant 0 : i32
    %c0_i32_2 = arith.constant 0 : i32
    return %c0_i32, %c0_i32_0, %c0_i32_1 : i32, i32, i32
  }
  func.func @transform_4(%arg0: i32, %arg1: i32) -> (i32, i32, i32) {
    %c0_i32 = arith.constant 0 : i32
    %c0_i32_0 = arith.constant 0 : i32
    %c0_i32_1 = arith.constant 0 : i32
    return %arg0, %c0_i32, %c0_i32_0 : i32, i32, i32
  }
}

</mosaic_0001>

<bundles_post_ra>
// kernel: tpu_custom_call.1
= control target key start
LH: loop header
LB: loop body
LE: loop exit
PB: predicated region body
PF: predicated region fallthrough
CT: control target
= control target key end

     0   :  { %s4429_s0 = inlined_call_operand.hbm [shape: bf16[10,4,256], index: 0, kind: input, shape index: {}]   ;;  %s4430_s1 = inlined_call_operand.hbm [shape: bf16[10,128,256], index: 1, kind: input, shape index: {}]   ;;  %s4431_s2 = inlined_call_operand.hbm [shape: bf16[10,128,256], index: 2, kind: input, shape index: {}]   ;;  %s4432_s3 = inlined_call_operand.hbm [shape: f32[2,16,10], index: 3, kind: input, shape index: {}]   ;;  %s4433_s4 = inlined_call_operand.hbm [shape: f32[4,16,128], index: 4, kind: output, shape index: {}]  }
   0x1   :  { %4448 = sst [smem:[#allocation19_spill]] %s4429_s0 }
   0x2   :  { %4449 = sst [smem:[#allocation20_spill]] %s4430_s1 }
   0x3   :  { %4450 = sst [smem:[#allocation21_spill]] %s4432_s3 }
   0x4   :  { %9 = vsyncpa [#allocation5], 0 }
   0x5   :  { %11 = vsyncpa [#allocation5 + $0x1], 0 }
   0x6   :  { %12 = vsyncpa [#allocation8], 0 }
   0x7   :  { %14 = vsyncpa [#allocation8 + $0x1], 0 }
   0x8   :  { %15 = vsyncpa [#allocation11], 0 }
   0x9   :  { %16 = vsyncpa [#allocation6], 0  ;;  %s3786_s15 = smov 0   ;;  %s3788_s16 = smov 0  }
   0xa   :  { %s3790_s17 = smov 0   ;;  %s3792_s18 = smov 0  }
   0xb   :  { %s3794_s19 = smov 0   ;;  %s3796_s20 = smov 0  }
   0xc LB: > { %s31_s21 = sadd.s32 1, %s3743_s19  ;;  %s43_s22 = sadd.s32 1, %s3735_s17  ;;  %s3747_s20 = sphi %s3796_s20, %s22_s20   ;;  %s3743_s19 = sphi %s3794_s19, %s4479_s19   ;;  %s3739_s18 = sphi %s3792_s18, %s4478_s18   ;;  %s3735_s17 = sphi %s3790_s17, %s4477_s17   ;;  %s3731_s16 = sphi %s3788_s16, %s4476_s16   ;;  %s3727_s15 = sphi %s3786_s15, %s4475_s15  }
   0xd   : > { %p32_p0 = scmp.ge.s32.totalorder %s31_s21, 2  ;;  %p50_p1 = scmp.ne.s32.totalorder %s3735_s17, %s3731_s16 }
   0xe   : > { %p51_p2 = scmp.eq.s32.totalorder %s3747_s20, 0  ;;  %p3240_p5 = scmp.lt.s32.totalorder %s3747_s20, 2 }
   0xf   : > { %s4481_s21 = smov (%p32_p0, %s31_s21), 0  ;;  %s3827_s24 = sand.u32 1, %s3735_s17  }
  0x10   : > { %4451 = sst [smem:[#allocation17_spill]] %s4481_s21  ;;  %p52_p3 = por %p51_p2, %p50_p1 }
  0x11   : > { %s38_s23 = ssub.s32 %s3743_s19, %s4481_s21  ;;  %s216_s25 = sand.u32 1, %s3747_s20  }
  0x12   : > { %p41_p4 = scmp.eq.s32.totalorder %s38_s23, 0  ;;  %p3833_p6 = pnand %p3240_p5, %p52_p3 }
  0x13   : > { %s4434_s28 = smul.u32 640, %s3827_s24  ;;  %s4454_s1 = sld [smem:[#allocation20_spill]] }
  0x14   : > { %s3831_s26 = scalar_select %p41_p4, %s3735_s17, %s43_s22  }
  0x15   : > { %s4453_s27 = scalar_select %p3833_p6, 1, 0 }
  0x16   : > { %4452 = sst [smem:[#allocation18_spill]] %s3831_s26  ;;  %s4435_s29 = smul.u32 10240, %s3743_s19 }
  0x17   : > { %s220_s7 = scalar_lea.vmem [#allocation7], %s4434_s28  ;;  %s3850_s9 = scalar_lea.sflag [#allocation8], %s216_s25 }
  0x18   : > { %s228_s8 = sshll.u32 %s220_s7, 4  ;;  %p3856_p8 = pneg %p3833_p6  ;;  %s3848_s8 = int_to_ptr.vmem [resolvable:$true] %s228_s8 }
  0x19   : > { %s3844_s6 = scalar_lea.hbm %s4454_s1, %s4435_s29  ;;  %s3546_s14 = scalar_lea.hbm %s4454_s1, 20480 }
  0x1a   : > { %s3541_s10 = scalar_lea.hbm %s3844_s6, 10240  ;;  %p3547_p11 = scmp.lt.u32.totalorder %s3844_s6, %s4454_s1 }
  0x1b   : > { %p3542_p7 = scmp.ne.s32.totalorder %s3844_s6, %s3541_s10  ;;  %p3548_p12 = scmp.lt.u32.totalorder %s3546_s14, %s3541_s10 }
  0x1c   : > { %s4455_s11 = scalar_select %p3856_p8, 1, 0 }
  0x1d   : > { %p3544_p9 = pnand %p3856_p8, %p3542_p7  ;;  %p3549_p13 = por %p3548_p12, %p3547_p11 }
  0x1e   : > { %p3550_p0 = scmp.lt.u32.totalorder %s3541_s10, %s3844_s6 }
  0x1f   : > { %p3545_p10 = pneg %p3544_p9 }
  0x20   : > { %p3551_p1 = por %p3550_p0, %p3549_p13 }
  0x22   : > { %p3552_p2 = pnand %p3551_p1, %p3545_p10 }
  0x24   : > { %3555 = shalt.err (!%p3552_p2)
}
  0x25   : > { %s3556_s25 = scalar_lea.vmem %s3848_s8, 10240  ;;  %s3749_s30 = smov [#allocation7]  }
  0x26   : > { %p3557_p3 = scmp.ne.s32.totalorder %s3848_s8, %s3556_s25  ;;  %s3561_s5 = sshll.u32 %s3749_s30, 4  ;;  %s3562_s5 = int_to_ptr.vmem [resolvable:$false] %s3561_s5 }
  0x27   : > { %s3563_s7 = scalar_lea.vmem %s3562_s5, 20480  ;;  %p3564_p7 = scmp.lt.s32.totalorder %s3848_s8, %s3562_s5 }
  0x28   : > { %p3559_p4 = pnand %p3557_p3, %p3856_p8  ;;  %p3565_p9 = scmp.lt.s32.totalorder %s3563_s7, %s3556_s25 }
  0x2a   : > { %p3560_p5 = pneg %p3559_p4  ;;  %p3566_p11 = por %p3565_p9, %p3564_p7 }
  0x2c   : > { %p3567_p12 = pnand %p3566_p11, %p3560_p5 }
  0x2e   : > { %3570 = shalt.err (!%p3567_p12)
}
  0x2f   : > { %s4436_s10 = smov 128   ;;  %s4438_s12 = smov 8  }
  0x30   : > { %3235 = dma.hbm_to_vmem [thread:$0]  (!%p3833_p6), %s3844_s6, 10240, %s3848_s8, %s3850_s9, %s4436_s10, %s4436_s10, %s4438_s12  }
  0x31   : > { %s3884_s13 = sadd.s32 4294967295, %s3747_s20   ;;  %p56_p10 = scmp.ne.s32.totalorder %s3731_s16, %s3727_s15 }
  0x32   : > { %p4441_p13 = scmp.eq.s32.totalorder %s3884_s13, 0  ;;  %p2847_p0 = scmp.ge.s32.totalorder %s3747_s20, 1 }
  0x33   : > { %p166_p1 = scmp.lt.s32.totalorder %s3747_s20, 3  ;;  %s3752_s6 = smov [#allocation10]  }
  0x34   : > { %p3893_p2 = por %p4441_p13, %p56_p10  ;;  %s178_s8 = sshll.u32 %s3752_s6, 4  ;;  %s179_s8 = int_to_ptr.vmem [resolvable:$true] %s178_s8 }
  0x35   : > { %p3897_p3 = pnand %p2847_p0, %p166_p1  ;;  %s3206_s23 = smul.u32 20, %s3827_s24 }
  0x36   : > { %s4456_s14 = scalar_select %p3893_p2, 1, 0 }
  0x37   : > { %s4457_s22 = scalar_select %p3897_p3, 1, 0 }
  0x38   : > { %p3225_p4 = pneg %p3897_p3  ;;  %s3059_s25 = smul.u32 320, %s3743_s19 }
  0x39   : > { %s4459_s0 = sld [smem:[#allocation19_spill]]  ;;  %s4460_s3 = sld [smem:[#allocation21_spill]] }
  0x3a   : > { %p3906_p5 = pnand %p3225_p4, %p4441_p13 }
  0x3c   : > { %p3573_p9 = pneg %p3906_p5 }
  0x3f   : > { %s3914_s7 = scalar_lea.hbm %s4459_s0, %s3059_s25  ;;  %s3571_s6 = scalar_lea.hbm %s4460_s3, 512 }
  0x40   : > { %p3572_p7 = scmp.ne.s32.totalorder %s4460_s3, %s3571_s6  ;;  %p3578_p10 = scmp.lt.u32.totalorder %s3571_s6, %s4460_s3 }
  0x42   : > { %p3574_p11 = pnand %p3573_p9, %p3572_p7 }
  0x44   : > { %p3575_p12 = pneg %p3574_p11 }
  0x46   : > { %p3580_p0 = pnand %p3578_p10, %p3575_p12 }
  0x48   : > { %3583 = shalt.err (!%p3580_p0)
}
  0x49   : > { %s3584_s25 = scalar_lea.vmem %s179_s8, 512  ;;  %p3592_p2 = scmp.lt.s32.totalorder %s179_s8, %s179_s8 }
  0x4a   : > { %p3585_p1 = scmp.ne.s32.totalorder %s179_s8, %s3584_s25  ;;  %p3593_p3 = scmp.lt.s32.totalorder %s3584_s25, %s3584_s25 }
  0x4c   : > { %p3587_p4 = pnand %p3585_p1, %p3573_p9  ;;  %p3594_p6 = por %p3593_p3, %p3592_p2 }
  0x4e   : > { %p3588_p13 = pneg %p3587_p4 }
  0x50   : > { %p3595_p8 = pnand %p3594_p6, %p3588_p13 }
  0x52   : > { %3598 = shalt.err (!%p3595_p8)
}
  0x53   : > { %s4461_s28 = smov 8   ;;  %s4462_s29 = smov 128  }
  0x54   : > { %3228 = dma.hbm_to_vmem [thread:$0]  (!%p3906_p5), %s4460_s3, 512, %s179_s8, [#allocation11], %s4462_s29, %s4462_s29, %s4461_s28  }
  0x55   : > { %s196_s1 = scalar_lea.vmem [#allocation4], %s3206_s23  ;;  %s4463_s30 = smul.u32 10240, %s3743_s19 }
  0x56   : > { %s206_s21 = sshll.u32 %s196_s1, 4  ;;  %s193_s25 = scalar_lea.sflag [#allocation5], %s3827_s24  ;;  %s3935_s21 = int_to_ptr.vmem [resolvable:$true] %s206_s21 }
  0x57   : > { %s3942_s6 = scalar_lea.hbm %s4431_s2, %s4463_s30  ;;  %s3599_s10 = scalar_lea.hbm %s3914_s7, 320 }
  0x58   : > { %p3600_p6 = scmp.ne.s32.totalorder %s3914_s7, %s3599_s10  ;;  %p4464_p8 = scmp.ne.s32.totalorder %s4455_s11, 0 }
  0x59   : > { %s3604_s8 = scalar_lea.hbm %s4459_s0, 640  ;;  %p3605_p3 = scmp.lt.u32.totalorder %s3914_s7, %s4459_s0 }
  0x5a   : > { %p3602_p13 = pnand %p3600_p6, %p4464_p8  ;;  %p3606_p5 = scmp.lt.u32.totalorder %s3604_s8, %s3599_s10 }
  0x5b   : > { %p3608_p9 = scmp.lt.u32.totalorder %s3599_s10, %s3914_s7 }
  0x5c   : > { %p3603_p2 = pneg %p3602_p13  ;;  %p3607_p7 = por %p3606_p5, %p3605_p3 }
  0x5e   : > { %p3609_p11 = por %p3608_p9, %p3607_p7 }
  0x60   : > { %p3610_p12 = pnand %p3609_p11, %p3603_p2 }
  0x62   : > { %3613 = shalt.err (!%p3610_p12)
}
  0x63   : > { %s3614_s30 = scalar_lea.vmem %s3935_s21, 320  ;;  %s3753_s26 = smov [#allocation4]  }
  0x64   : > { %p3615_p10 = scmp.ne.s32.totalorder %s3935_s21, %s3614_s30  ;;  %s3619_s15 = sshll.u32 %s3753_s26, 4  ;;  %s3620_s15 = int_to_ptr.vmem [resolvable:$false] %s3619_s15 }
  0x65   : > { %s3621_s5 = scalar_lea.vmem %s3620_s15, 640  ;;  %p3622_p4 = scmp.lt.s32.totalorder %s3935_s21, %s3620_s15 }
  0x66   : > { %p3617_p0 = pnand %p3615_p10, %p4464_p8  ;;  %p3623_p6 = scmp.lt.s32.totalorder %s3621_s5, %s3614_s30 }
  0x68   : > { %p3618_p1 = pneg %p3617_p0  ;;  %p3624_p13 = por %p3623_p6, %p3622_p4 }
  0x6a   : > { %p3625_p3 = pnand %p3624_p13, %p3618_p1 }
  0x6c   : > { %3628 = shalt.err (!%p3625_p3)
}
  0x6d   : > { %s3754_s10 = smov 64   ;;  %s3755_s12 = smov 4  }
  0x6e   : > { %p4465_p2 = scmp.ne.s32.totalorder %s4453_s27, 0  ;;  %s4466_s8 = smul.u32 640, %s3827_s24 }
  0x6f   : > { %s3629_s30 = scalar_lea.hbm %s3942_s6, 10240  ;;  %s3634_s5 = scalar_lea.hbm %s4431_s2, 20480 }
  0x70   : > { %3232 = dma.hbm_to_vmem [thread:$0]  (!%p4465_p2), %s3914_s7, 320, %s3935_s21, %s193_s25, %s3754_s10, %s3754_s10, %s3755_s12  }
  0x71   : > { %s242_s23 = scalar_lea.vmem [#allocation9], %s4466_s8  ;;  %p3630_p5 = scmp.ne.s32.totalorder %s3942_s6, %s3629_s30 }
  0x72   : > { %s250_s1 = sshll.u32 %s242_s23, 4  ;;  %p3635_p11 = scmp.lt.u32.totalorder %s3942_s6, %s4431_s2  ;;  %s3970_s1 = int_to_ptr.vmem [resolvable:$true] %s250_s1 }
  0x73   : > { %p3632_p7 = pnand %p3630_p5, %p4464_p8  ;;  %p3636_p12 = scmp.lt.u32.totalorder %s3634_s5, %s3629_s30 }
  0x74   : > { %p3638_p0 = scmp.lt.u32.totalorder %s3629_s30, %s3942_s6 }
  0x75   : > { %p3633_p9 = pneg %p3632_p7  ;;  %p3637_p10 = por %p3636_p12, %p3635_p11 }
  0x77   : > { %p3639_p1 = por %p3638_p0, %p3637_p10 }
  0x79   : > { %p3640_p4 = pnand %p3639_p1, %p3633_p9 }
  0x7b   : > { %3643 = shalt.err (!%p3640_p4)
}
  0x7c   : > { %s3644_s24 = scalar_lea.vmem %s3970_s1, 10240  ;;  %s3756_s7 = smov [#allocation9]  }
  0x7d   : > { %p3645_p6 = scmp.ne.s32.totalorder %s3970_s1, %s3644_s24  ;;  %s3649_s21 = sshll.u32 %s3756_s7, 4  ;;  %s3650_s21 = int_to_ptr.vmem [resolvable:$false] %s3649_s21 }
  0x7e   : > { %s3651_s0 = scalar_lea.vmem %s3650_s21, 20480  ;;  %p3652_p5 = scmp.lt.s32.totalorder %s3970_s1, %s3650_s21 }
  0x7f   : > { %p3647_p13 = pnand %p3645_p6, %p4464_p8  ;;  %p3653_p7 = scmp.lt.s32.totalorder %s3651_s0, %s3644_s24 }
  0x81   : > { %p3648_p3 = pneg %p3647_p13  ;;  %p3654_p11 = por %p3653_p7, %p3652_p5 }
  0x83   : > { %p3655_p12 = pnand %p3654_p11, %p3648_p3 }
  0x85   : > { %3658 = shalt.err (!%p3655_p12)
}
  0x86   : > { %3238 = dma.hbm_to_vmem [thread:$0]  (!%p4465_p2), %s3942_s6, 10240, %s3970_s1, %s3850_s9, %s4462_s29, %s4462_s29, %s4461_s28  }
  0x87   : > { %p4467_p8 = scmp.ne.s32.totalorder %s4457_s22, 0 }
  0x88   : > { %s264_s3 = sand.u32 (!%p4467_p8), 1, %s3731_s16   ;;  %p4468_p9 = scmp.ne.s32.totalorder (!%p4467_p8), %s4456_s14, 0 }
  0x89   : > { %262 = sbr.rel (%p4467_p8) target bundleno = 981 (0x3d5), region = 36  ;;  %s265_s25 = scalar_lea.sflag (!%p4467_p8), [#allocation5], %s264_s3 }
  0x8a   : > { %s3209_s11 = smul.u32 (!%p4467_p8), 20, %s264_s3 }
  0x8c   : > { %s4000_s10 = scalar_lea.vmem (!%p4467_p8), [#allocation4], %s3209_s11 }
  0x90   : > { %3710 = dma.done.wait (%p4468_p9), %s265_s25, 320  }
  0x91   : > { %3712 = vsyncadd (%p4468_p9), %s265_s25, 4294966976  ;;  %s273_s27 = sand.u32 1, %s3884_s13   ;;  %s3210_s12 = smul.u32 640, %s264_s3 }
  0x92   : > { %s274_s9 = scalar_lea.sflag [#allocation8], %s273_s27 }
  0x93   : > { %s4007_s28 = scalar_lea.vmem [#allocation7], %s3210_s12 }
  0x94   : > { %3714 = dma.done.wait (%p4468_p9), %s274_s9, 20480  }
  0x95   : > { %3716 = vsyncadd (%p4468_p9), %s274_s9, 4294946816  ;;  %s4013_s22 = scalar_lea.vmem [#allocation9], %s3210_s12  ;;  %p4469_p2 = scmp.eq.s32.totalorder %s3884_s13, 0 }
  0x97   : > { %3718 = dma.done.wait (%p4469_p2), [#allocation11], 512   ;;  %p4470_p10 = pmov %p4469_p2 }
  0x98   : > { %v3301_v0 = vld [vmem:[%s4007_s28 + $0x4] ss:$8 sps:$4 sm:$0xff]   ;;  %v3305_v2 = vld [vmem:[%s4007_s28] ss:$8 sps:$4 sm:$0xff]   ;;  %v3307_v4 = vld [vmem:[%s4007_s28 + $0x14] ss:$8 sps:$4 sm:$0xff]  }
  0x99   : > { %3720 = vsyncadd (%p4470_p10), [#allocation11], 4294966784  ;;  %v3303_v1 = vld [vmem:[%s4007_s28 + $0x84] ss:$8 sps:$4 sm:$0xff]   ;;  %501 = vmatprep.subr.bf16.mxu0 %v3301_v0  ;;  %v3306_v3 = vld [vmem:[%s4007_s28 + $0x80] ss:$8 sps:$4 sm:$0xff]  }
  0x9a   : > { %632 = vmatprep.subr.bf16.mxu1 %v3303_v1  ;;  %502 = vmatpush1.bf16.xpose.msra.mxu0 %v3305_v2  ;;  %v3309_v5 = vld [vmem:[%s4007_s28 + $0x94] ss:$8 sps:$4 sm:$0xff]   ;;  %v3311_v6 = vld [vmem:[%s4007_s28 + $0x10] ss:$8 sps:$4 sm:$0xff]   ;;  %v3313_v8 = vld [vmem:[%s4007_s28 + $0x24] ss:$8 sps:$4 sm:$0xff]  }
  0x9b   : > { %633 = vmatpush1.bf16.xpose.msra.mxu1 %v3306_v3  ;;  %503 = vmatprep.subr.bf16.mxu0 %v3307_v4  ;;  %v3312_v7 = vld [vmem:[%s4007_s28 + $0x90] ss:$8 sps:$4 sm:$0xff]   ;;  %v3315_v9 = vld [vmem:[%s4007_s28 + $0xa4] ss:$8 sps:$4 sm:$0xff]   ;;  %v3317_v10 = vld [vmem:[%s4007_s28 + $0x20] ss:$8 sps:$4 sm:$0xff]  }
  0x9c   : > { %634 = vmatprep.subr.bf16.mxu1 %v3309_v5  ;;  %v3318_v11 = vld [vmem:[%s4007_s28 + $0xa0] ss:$8 sps:$4 sm:$0xff]   ;;  %v3319_v12 = vld [vmem:[%s4007_s28 + $0x34] ss:$8 sps:$4 sm:$0xff]   ;;  %v3323_v17 = vld [vmem:[%s4007_s28 + $0x30] ss:$8 sps:$4 sm:$0xff]  }
  0x9d   : > { %v3321_v13 = vld [vmem:[%s4007_s28 + $0xb4] ss:$8 sps:$4 sm:$0xff]   ;;  %v4034_v14 = vld.sshfl [vmem:[%s4000_s10] sm:$0x33 pattern:$0x76325410] }
  0x9e   : > { %v4038_v15 = vcombine.high %v4034_v14, %v4034_v14  ;;  %v4041_v16 = vld.sshfl [vmem:[%s4000_s10 + $0x4] sm:$0x33 pattern:$0x76325410]  ;;  %v3325_v20 = vld [vmem:[%s4007_s28 + $0x44] ss:$8 sps:$4 sm:$0xff]  }
  0x9f   : > { %v4046_v18 = vcombine.high %v4041_v16, %v4041_v16  ;;  %v3324_v19 = vld [vmem:[%s4007_s28 + $0xb0] ss:$8 sps:$4 sm:$0xff]   ;;  %v3327_v21 = vld [vmem:[%s4007_s28 + $0xc4] ss:$8 sps:$4 sm:$0xff]   ;;  %v3329_v22 = vld [vmem:[%s4007_s28 + $0x40] ss:$8 sps:$4 sm:$0xff]  }
  0xa0   : > { %533 = vmatprep.mubr.bf16.mxu0 %v4038_v15  ;;  %v3330_v23 = vld [vmem:[%s4007_s28 + $0xc0] ss:$8 sps:$4 sm:$0xff]   ;;  %v3331_v24 = vld [vmem:[%s4007_s28 + $0x54] ss:$8 sps:$4 sm:$0xff]   ;;  %v3335_v26 = vld [vmem:[%s4007_s28 + $0x50] ss:$8 sps:$4 sm:$0xff]  }
  0xa1   : > { %664 = vmatprep.mubr.bf16.mxu1 %v4046_v18  ;;  %v3333_v25 = vld [vmem:[%s4007_s28 + $0xd4] ss:$8 sps:$4 sm:$0xff]   ;;  %v3336_v27 = vld [vmem:[%s4007_s28 + $0xd0] ss:$8 sps:$4 sm:$0xff]   ;;  %v3337_v28 = vld [vmem:[%s4007_s28 + $0x64] ss:$8 sps:$4 sm:$0xff]  }
  0xa2   : > { %504 = vmatpush1.bf16.xpose.msra.mxu0 %v3311_v6  ;;  %v3339_v29 = vld [vmem:[%s4007_s28 + $0xe4] ss:$8 sps:$4 sm:$0xff]   ;;  %v3341_v30 = vld [vmem:[%s4007_s28 + $0x60] ss:$8 sps:$4 sm:$0xff]   ;;  %v3343_v32 = vld [vmem:[%s4007_s28 + $0x74] ss:$8 sps:$4 sm:$0xff]  }
  0xa3   : > { %635 = vmatpush1.bf16.xpose.msra.mxu1 %v3312_v7  ;;  %505 = vmatprep.subr.bf16.mxu0 %v3313_v8  ;;  %v3342_v31 = vld [vmem:[%s4007_s28 + $0xe0] ss:$8 sps:$4 sm:$0xff]   ;;  %v3345_v33 = vld [vmem:[%s4007_s28 + $0xf4] ss:$8 sps:$4 sm:$0xff]   ;;  %v3347_v34 = vld [vmem:[%s4007_s28 + $0x70] ss:$8 sps:$4 sm:$0xff]  }
  0xa4   : > { %636 = vmatprep.subr.bf16.mxu1 %v3315_v9  ;;  %v3348_v35 = vld [vmem:[%s4007_s28 + $0xf0] ss:$8 sps:$4 sm:$0xff]   ;;  %v3351_v36 = vld [vmem:[%s4007_s28 + $0x104] ss:$8 sps:$4 sm:$0xff]   ;;  %v3349_v40 = vld [vmem:[%s4007_s28 + $0x100] ss:$8 sps:$4 sm:$0xff]  }
  0xa5   : > { %v3354_v37 = vld [vmem:[%s4007_s28 + $0x184] ss:$8 sps:$4 sm:$0xff]   ;;  %v4070_v38 = vld.sshfl [vmem:[%s4000_s10 + $0x8] sm:$0x33 pattern:$0x76325410] }
  0xa6   : > { %v4073_v39 = vld.sshfl [vmem:[%s4000_s10 + $0xc] sm:$0x33 pattern:$0x76325410]  ;;  %v3352_v41 = vld [vmem:[%s4007_s28 + $0x180] ss:$8 sps:$4 sm:$0xff]   ;;  %v4081_v44 = vcombine.high %v4070_v38, %v4070_v38 }
  0xa7   : > { %v3357_v42 = vld [vmem:[%s4007_s28 + $0x114] ss:$8 sps:$4 sm:$0xff]   ;;  %v4085_v45 = vcombine.high %v4073_v39, %v4073_v39  ;;  %v3355_v46 = vld [vmem:[%s4007_s28 + $0x110] ss:$8 sps:$4 sm:$0xff]   ;;  %v3363_v48 = vld [vmem:[%s4007_s28 + $0x124] ss:$8 sps:$4 sm:$0xff]  }
  0xa8   : > { %v3360_v43 = vld [vmem:[%s4007_s28 + $0x194] ss:$8 sps:$4 sm:$0xff]   ;;  %v3358_v47 = vld [vmem:[%s4007_s28 + $0x190] ss:$8 sps:$4 sm:$0xff]   ;;  %v3366_v49 = vld [vmem:[%s4007_s28 + $0x1a4] ss:$8 sps:$4 sm:$0xff]  }
  0xa9   : > { %v3361_v50 = vld [vmem:[%s4007_s28 + $0x120] ss:$8 sps:$4 sm:$0xff]   ;;  %v3369_v52 = vld [vmem:[%s4007_s28 + $0x134] ss:$8 sps:$4 sm:$0xff]   ;;  %v3367_v54 = vld [vmem:[%s4007_s28 + $0x130] ss:$8 sps:$4 sm:$0xff]  }
  0xaa   : > { %506 = vmatpush1.bf16.xpose.msra.mxu0 %v3317_v10  ;;  %v3364_v51 = vld [vmem:[%s4007_s28 + $0x1a0] ss:$8 sps:$4 sm:$0xff]   ;;  %v3372_v53 = vld [vmem:[%s4007_s28 + $0x1b4] ss:$8 sps:$4 sm:$0xff]   ;;  %v3370_v55 = vld [vmem:[%s4007_s28 + $0x1b0] ss:$8 sps:$4 sm:$0xff]  }
  0xab   : > { %637 = vmatpush1.bf16.xpose.msra.mxu1 %v3318_v11  ;;  %507 = vmatprep.subr.bf16.mxu0 %v3319_v12  ;;  %v3375_v56 = vld [vmem:[%s4007_s28 + $0x144] ss:$8 sps:$4 sm:$0xff]   ;;  %v3373_v58 = vld [vmem:[%s4007_s28 + $0x140] ss:$8 sps:$4 sm:$0xff]   ;;  %v3381_v60 = vld [vmem:[%s4007_s28 + $0x154] ss:$8 sps:$4 sm:$0xff]  }
  0xac   : > { %638 = vmatprep.subr.bf16.mxu1 %v3321_v13  ;;  %v3378_v57 = vld [vmem:[%s4007_s28 + $0x1c4] ss:$8 sps:$4 sm:$0xff]   ;;  %v3376_v59 = vld [vmem:[%s4007_s28 + $0x1c0] ss:$8 sps:$4 sm:$0xff]   ;;  %v3384_v61 = vld [vmem:[%s4007_s28 + $0x1d4] ss:$8 sps:$4 sm:$0xff]  }
  0xad   : > { %v3379_v62 = vld [vmem:[%s4007_s28 + $0x150] ss:$8 sps:$4 sm:$0xff]   ;;  %v3387_v0 = vld [vmem:[%s4007_s28 + $0x164] ss:$8 sps:$4 sm:$0xff]   ;;  %v3385_v2 = vld [vmem:[%s4007_s28 + $0x160] ss:$8 sps:$4 sm:$0xff]  }
  0xae   : > { %v3382_v63 = vld [vmem:[%s4007_s28 + $0x1d0] ss:$8 sps:$4 sm:$0xff]   ;;  %v3390_v1 = vld [vmem:[%s4007_s28 + $0x1e4] ss:$8 sps:$4 sm:$0xff]   ;;  %v3388_v3 = vld [vmem:[%s4007_s28 + $0x1e0] ss:$8 sps:$4 sm:$0xff]  }
  0xaf   : > { %v3393_v4 = vld [vmem:[%s4007_s28 + $0x174] ss:$8 sps:$4 sm:$0xff]   ;;  %v3391_v6 = vld [vmem:[%s4007_s28 + $0x170] ss:$8 sps:$4 sm:$0xff]   ;;  %v3399_v8 = vld [vmem:[%s4007_s28 + $0x204] ss:$8 sps:$4 sm:$0xff]  }
  0xb0   : > { %v3396_v5 = vld [vmem:[%s4007_s28 + $0x1f4] ss:$8 sps:$4 sm:$0xff]   ;;  %v3394_v7 = vld [vmem:[%s4007_s28 + $0x1f0] ss:$8 sps:$4 sm:$0xff]   ;;  %v3402_v9 = vld [vmem:[%s4013_s22 + $0x4] ss:$8 sps:$4 sm:$0xff]  }
  0xb1   : > { %v4120_v10 = vld.sshfl [vmem:[%s4000_s10 + $0x10] sm:$0x33 pattern:$0x76325410]  ;;  %s3023_s14 = smul.u32 20, %s3739_s18  ;;  %p3024_p0 = scmp.ne.s32.totalorder %s3739_s18, 1 }
  0xb2   : > { %508 = vmatpush1.bf16.xpose.msra.mxu0 %v3323_v17  ;;  %v3397_v11 = vld [vmem:[%s4007_s28 + $0x200] ss:$8 sps:$4 sm:$0xff]   ;;  %v3405_v13 = vld [vmem:[%s4007_s28 + $0x214] ss:$8 sps:$4 sm:$0xff]   ;;  %vm1799_vm0 = vcmask (!%p3024_p0), 1041409   ;;  %vm1802_vm1 = vcmask (!%p3024_p0), 1042434  }
  0xb3   : > { %639 = vmatpush1.bf16.xpose.msra.mxu1 %v3324_v19  ;;  %509 = vmatprep.subr.bf16.mxu0 %v3325_v20  ;;  %v3400_v12 = vld [vmem:[%s4013_s22] ss:$8 sps:$4 sm:$0xff]   ;;  %v3408_v17 = vld [vmem:[%s4013_s22 + $0x14] ss:$8 sps:$4 sm:$0xff]   ;;  %v4128_v19 = vcombine.high %v4120_v10, %v4120_v10  ;;  %v3403_v20 = vld [vmem:[%s4007_s28 + $0x210] ss:$8 sps:$4 sm:$0xff]  }
  0xb4   : > { %640 = vmatprep.subr.bf16.mxu1 %v3327_v21  ;;  %v3406_v21 = vld [vmem:[%s4013_s22 + $0x10] ss:$8 sps:$4 sm:$0xff]   ;;  %s4217_s29 = scalar_lea.vmem [#allocation2], %s3023_s14  ;;  %s1753_s6 = scalar_lea.vmem [#allocation3], %s3023_s14  ;;  %vm1805_vm2 = vcmask (!%p3024_p0), 1043459   ;;  %vm1808_vm3 = vcmask (!%p3024_p0), 1044484  }
  0xb5   : > { %vm1811_vm4 = vcmask (!%p3024_p0), 1045509   ;;  %vm1814_vm5 = vcmask (!%p3024_p0), 1046534   ;;  %vm1817_vm6 = vcmask (!%p3024_p0), 1047559   ;;  %vm1829_vm7 = vcmask (!%p3024_p0), 1041408  }
  0xb6   : > { %vm3757_vm8 = vmmov (!%p3024_p0), 1   ;;  %vm1822_vm10 = vcmask (!%p3024_p0), 80896  }
  0xb7   : > { %vm4259_vm9 = vmpackc.low (!%p3024_p0), %vm1829_vm7, %vm3757_vm8 }
  0xba   : > { %510 = vmatpush1.bf16.xpose.msra.mxu0 %v3329_v22  ;;  %v3411_v22 = vld [vmem:[%s4007_s28 + $0x224] ss:$8 sps:$4 sm:$0xff]  }
  0xbb   : > { %641 = vmatpush1.bf16.xpose.msra.mxu1 %v3330_v23  ;;  %511 = vmatprep.subr.bf16.mxu0 %v3331_v24  ;;  %v3414_v23 = vld [vmem:[%s4013_s22 + $0x24] ss:$8 sps:$4 sm:$0xff]   ;;  %v3409_v24 = vld [vmem:[%s4007_s28 + $0x220] ss:$8 sps:$4 sm:$0xff]  }
  0xbc   : > { %642 = vmatprep.subr.bf16.mxu1 %v3333_v25  ;;  %v3412_v25 = vld [vmem:[%s4013_s22 + $0x20] ss:$8 sps:$4 sm:$0xff]  }
  0xc2   : > { %512 = vmatpush1.bf16.xpose.msra.mxu0 %v3335_v26  ;;  %v3417_v26 = vld [vmem:[%s4007_s28 + $0x234] ss:$8 sps:$4 sm:$0xff]  }
  0xc3   : > { %643 = vmatpush1.bf16.xpose.msra.mxu1 %v3336_v27  ;;  %513 = vmatprep.subr.bf16.mxu0 %v3337_v28  ;;  %v3420_v27 = vld [vmem:[%s4013_s22 + $0x34] ss:$8 sps:$4 sm:$0xff]   ;;  %v3418_v28 = vld [vmem:[%s4013_s22 + $0x30] ss:$8 sps:$4 sm:$0xff]  }
  0xc4   : > { %644 = vmatprep.subr.bf16.mxu1 %v3339_v29  ;;  %v3423_v29 = vld [vmem:[%s4007_s28 + $0x244] ss:$8 sps:$4 sm:$0xff]  }
  0xca   : > { %514 = vmatpush1.bf16.xpose.msra.mxu0 %v3341_v30  ;;  %v3426_v30 = vld [vmem:[%s4013_s22 + $0x44] ss:$8 sps:$4 sm:$0xff]  }
  0xcb   : > { %645 = vmatpush1.bf16.xpose.msra.mxu1 %v3342_v31  ;;  %515 = vmatprep.subr.bf16.mxu0 %v3343_v32  ;;  %v3421_v31 = vld [vmem:[%s4007_s28 + $0x240] ss:$8 sps:$4 sm:$0xff]  }
  0xcc   : > { %646 = vmatprep.subr.bf16.mxu1 %v3345_v33  ;;  %v3424_v32 = vld [vmem:[%s4013_s22 + $0x40] ss:$8 sps:$4 sm:$0xff]   ;;  %v3429_v33 = vld [vmem:[%s4007_s28 + $0x254] ss:$8 sps:$4 sm:$0xff]  }
  0xd2   : > { %516 = vmatpush1.bf16.xpose.msra.mxu0 %v3347_v34  ;;  %v3432_v34 = vld [vmem:[%s4013_s22 + $0x54] ss:$8 sps:$4 sm:$0xff]  }
  0xd3   : > { %647 = vmatpush1.bf16.xpose.msra.mxu1 %v3348_v35  ;;  %763 = vmatprep.subr.bf16.mxu0 %v3351_v36  ;;  %v3427_v35 = vld [vmem:[%s4007_s28 + $0x250] ss:$8 sps:$4 sm:$0xff]  }
  0xd4   : > { %894 = vmatprep.subr.bf16.mxu1 %v3354_v37  ;;  %v3430_v36 = vld [vmem:[%s4013_s22 + $0x50] ss:$8 sps:$4 sm:$0xff]   ;;  %v3435_v37 = vld [vmem:[%s4007_s28 + $0x264] ss:$8 sps:$4 sm:$0xff]  }
  0xd9   : > { %534 = vmatmul.mubr.bf16.vlgmr.msra.gmra.mrb[0].mxu0 %v4034_v14 }
  0xda   : > { %665 = vmatmul.mubr.bf16.vlgmr.msra.gmra.mrb[0].mxu1 %v4041_v16  ;;  %764 = vmatpush1.bf16.xpose.msra.mxu0 %v3349_v40  ;;  %v3438_v40 = vld [vmem:[%s4013_s22 + $0x64] ss:$8 sps:$4 sm:$0xff]  }
  0xdb   : > { %895 = vmatpush1.bf16.xpose.msra.mxu1 %v3352_v41  ;;  %765 = vmatprep.subr.bf16.mxu0 %v3357_v42  ;;  %v3433_v41 = vld [vmem:[%s4007_s28 + $0x260] ss:$8 sps:$4 sm:$0xff]  }
  0xdc   : > { %896 = vmatprep.subr.bf16.mxu1 %v3360_v43  ;;  %795 = vmatprep.mubr.bf16.mxu0 %v4081_v44  ;;  %v3436_v42 = vld [vmem:[%s4013_s22 + $0x60] ss:$8 sps:$4 sm:$0xff]   ;;  %v3441_v43 = vld [vmem:[%s4007_s28 + $0x274] ss:$8 sps:$4 sm:$0xff]  }
  0xdd   : > { %926 = vmatprep.mubr.bf16.mxu1 %v4085_v45 }
  0xe2   : > { %766 = vmatpush1.bf16.xpose.msra.mxu0 %v3355_v46  ;;  %v3444_v46 = vld [vmem:[%s4013_s22 + $0x74] ss:$8 sps:$4 sm:$0xff]  }
  0xe3   : > { %897 = vmatpush1.bf16.xpose.msra.mxu1 %v3358_v47  ;;  %767 = vmatprep.subr.bf16.mxu0 %v3363_v48  ;;  %v3439_v47 = vld [vmem:[%s4007_s28 + $0x270] ss:$8 sps:$4 sm:$0xff]  }
  0xe4   : > { %898 = vmatprep.subr.bf16.mxu1 %v3366_v49  ;;  %v3442_v48 = vld [vmem:[%s4013_s22 + $0x70] ss:$8 sps:$4 sm:$0xff]   ;;  %v3447_v49 = vld [vmem:[%s4013_s22 + $0x84] ss:$8 sps:$4 sm:$0xff]  }
  0xea   : > { %768 = vmatpush1.bf16.xpose.msra.mxu0 %v3361_v50  ;;  %v3450_v50 = vld [vmem:[%s4013_s22 + $0x104] ss:$8 sps:$4 sm:$0xff]  }
  0xeb   : > { %899 = vmatpush1.bf16.xpose.msra.mxu1 %v3364_v51  ;;  %769 = vmatprep.subr.bf16.mxu0 %v3369_v52  ;;  %v3445_v51 = vld [vmem:[%s4013_s22 + $0x80] ss:$8 sps:$4 sm:$0xff]  }
  0xec   : > { %900 = vmatprep.subr.bf16.mxu1 %v3372_v53  ;;  %v3448_v52 = vld [vmem:[%s4013_s22 + $0x100] ss:$8 sps:$4 sm:$0xff]   ;;  %v3453_v53 = vld [vmem:[%s4013_s22 + $0x94] ss:$8 sps:$4 sm:$0xff]  }
  0xf2   : > { %770 = vmatpush1.bf16.xpose.msra.mxu0 %v3367_v54  ;;  %v3456_v54 = vld [vmem:[%s4013_s22 + $0x114] ss:$8 sps:$4 sm:$0xff]  }
  0xf3   : > { %901 = vmatpush1.bf16.xpose.msra.mxu1 %v3370_v55  ;;  %771 = vmatprep.subr.bf16.mxu0 %v3375_v56  ;;  %v3451_v55 = vld [vmem:[%s4013_s22 + $0x90] ss:$8 sps:$4 sm:$0xff]  }
  0xf4   : > { %902 = vmatprep.subr.bf16.mxu1 %v3378_v57  ;;  %v3454_v56 = vld [vmem:[%s4013_s22 + $0x110] ss:$8 sps:$4 sm:$0xff]   ;;  %v3459_v57 = vld [vmem:[%s4013_s22 + $0xa4] ss:$8 sps:$4 sm:$0xff]  }
  0xfa   : > { %772 = vmatpush1.bf16.xpose.msra.mxu0 %v3373_v58  ;;  %v3462_v58 = vld [vmem:[%s4013_s22 + $0x124] ss:$8 sps:$4 sm:$0xff]  }
  0xfb   : > { %903 = vmatpush1.bf16.xpose.msra.mxu1 %v3376_v59  ;;  %773 = vmatprep.subr.bf16.mxu0 %v3381_v60  ;;  %v3460_v59 = vld [vmem:[%s4013_s22 + $0x120] ss:$8 sps:$4 sm:$0xff]   ;;  %v3465_v60 = vld [vmem:[%s4013_s22 + $0xb4] ss:$8 sps:$4 sm:$0xff]  }
  0xfc   : > { %904 = vmatprep.subr.bf16.mxu1 %v3384_v61  ;;  %v3466_v61 = vld [vmem:[%s4013_s22 + $0x130] ss:$8 sps:$4 sm:$0xff]  }
 0x102   : > { %774 = vmatpush1.bf16.xpose.msra.mxu0 %v3379_v62  ;;  %v3471_v62 = vld [vmem:[%s4013_s22 + $0xc4] ss:$8 sps:$4 sm:$0xff]  }
 0x103   : > { %905 = vmatpush1.bf16.xpose.msra.mxu1 %v3382_v63  ;;  %775 = vmatprep.subr.bf16.mxu0 %v3387_v0  ;;  %v3474_v63 = vld [vmem:[%s4013_s22 + $0x144] ss:$8 sps:$4 sm:$0xff]   ;;  %v3469_v0 = vld [vmem:[%s4013_s22 + $0xc0] ss:$8 sps:$4 sm:$0xff]  }
 0x104   : > { %906 = vmatprep.subr.bf16.mxu1 %v3390_v1  ;;  %v3472_v1 = vld [vmem:[%s4013_s22 + $0x140] ss:$8 sps:$4 sm:$0xff]  }
 0x10a   : > { %776 = vmatpush1.bf16.xpose.msra.mxu0 %v3385_v2  ;;  %v3477_v2 = vld [vmem:[%s4013_s22 + $0xd4] ss:$8 sps:$4 sm:$0xff]  }
 0x10b   : > { %907 = vmatpush1.bf16.xpose.msra.mxu1 %v3388_v3  ;;  %777 = vmatprep.subr.bf16.mxu0 %v3393_v4  ;;  %v3480_v3 = vld [vmem:[%s4013_s22 + $0x154] ss:$8 sps:$4 sm:$0xff]   ;;  %v3475_v4 = vld [vmem:[%s4013_s22 + $0xd0] ss:$8 sps:$4 sm:$0xff]  }
 0x10c   : > { %908 = vmatprep.subr.bf16.mxu1 %v3396_v5  ;;  %v3478_v5 = vld [vmem:[%s4013_s22 + $0x150] ss:$8 sps:$4 sm:$0xff]  }
 0x112   : > { %778 = vmatpush1.bf16.xpose.msra.mxu0 %v3391_v6  ;;  %v3483_v6 = vld [vmem:[%s4013_s22 + $0xe4] ss:$8 sps:$4 sm:$0xff]  }
 0x113   : > { %909 = vmatpush1.bf16.xpose.msra.mxu1 %v3394_v7  ;;  %1025 = vmatprep.subr.bf16.mxu0 %v3399_v8  ;;  %v3486_v7 = vld [vmem:[%s4013_s22 + $0x164] ss:$8 sps:$4 sm:$0xff]   ;;  %v3481_v8 = vld [vmem:[%s4013_s22 + $0xe0] ss:$8 sps:$4 sm:$0xff]  }
 0x114   : > { %1225 = vmatprep.subr.bf16.mxu1 %v3402_v9  ;;  %v3484_v9 = vld [vmem:[%s4013_s22 + $0x160] ss:$8 sps:$4 sm:$0xff]  }
 0x119   : > { %796 = vmatmul.mubr.bf16.vlgmr.msra.gmra.mrb[4].mxu0 %v4070_v38 }
 0x11a   : > { %927 = vmatmul.mubr.bf16.vlgmr.msra.gmra.mrb[4].mxu1 %v4073_v39  ;;  %1026 = vmatpush1.bf16.xpose.msra.mxu0 %v3397_v11  ;;  %v3489_v11 = vld [vmem:[%s4013_s22 + $0xf4] ss:$8 sps:$4 sm:$0xff]  }
 0x11b   : > { %1226 = vmatpush1.bf16.xpose.msra.mxu1 %v3400_v12  ;;  %1027 = vmatprep.subr.bf16.mxu0 %v3405_v13  ;;  %v3492_v12 = vld [vmem:[%s4013_s22 + $0x174] ss:$8 sps:$4 sm:$0xff]   ;;  %v3487_v13 = vld [vmem:[%s4013_s22 + $0xf0] ss:$8 sps:$4 sm:$0xff]  }
 0x11c   : > { %1227 = vmatprep.subr.bf16.mxu1 %v3408_v17  ;;  %1057 = vmatprep.mubr.bf16.mxu0 %v4128_v19  ;;  %v3490_v17 = vld [vmem:[%s4013_s22 + $0x170] ss:$8 sps:$4 sm:$0xff]  }
 0x11d   : > { %1257 = vmatprep.mubr.bf16.mxu1 %v4038_v15  ;;  %v3415_v15 = vld [vmem:[%s4007_s28 + $0x230] ss:$8 sps:$4 sm:$0xff]  }
 0x122   : > { %1028 = vmatpush1.bf16.xpose.msra.mxu0 %v3403_v20  ;;  %v3495_v20 = vld [vmem:[%s4013_s22 + $0x184] ss:$8 sps:$4 sm:$0xff]  }
 0x123   : > { %1228 = vmatpush1.bf16.xpose.msra.mxu1 %v3406_v21  ;;  %1029 = vmatprep.subr.bf16.mxu0 %v3411_v22  ;;  %v3498_v21 = vld [vmem:[%s4013_s22 + $0x204] ss:$8 sps:$4 sm:$0xff]   ;;  %v3493_v22 = vld [vmem:[%s4013_s22 + $0x180] ss:$8 sps:$4 sm:$0xff]  }
 0x124   : > { %1229 = vmatprep.subr.bf16.mxu1 %v3414_v23  ;;  %v3496_v23 = vld [vmem:[%s4013_s22 + $0x200] ss:$8 sps:$4 sm:$0xff]  }
 0x12a   : > { %1030 = vmatpush1.bf16.xpose.msra.mxu0 %v3409_v24  ;;  %v3501_v24 = vld [vmem:[%s4013_s22 + $0x194] ss:$8 sps:$4 sm:$0xff]  }
 0x12b   : > { %1230 = vmatpush1.bf16.xpose.msra.mxu1 %v3412_v25  ;;  %1031 = vmatprep.subr.bf16.mxu0 %v3417_v26  ;;  %v3504_v25 = vld [vmem:[%s4013_s22 + $0x214] ss:$8 sps:$4 sm:$0xff]   ;;  %v3499_v26 = vld [vmem:[%s4013_s22 + $0x190] ss:$8 sps:$4 sm:$0xff]  }
 0x12c   : > { %1231 = vmatprep.subr.bf16.mxu1 %v3420_v27  ;;  %v3502_v27 = vld [vmem:[%s4013_s22 + $0x210] ss:$8 sps:$4 sm:$0xff]  }
 0x132   : > { %1032 = vmatpush1.bf16.xpose.msra.mxu0 %v3415_v15  ;;  %v3507_v15 = vld [vmem:[%s4013_s22 + $0x1a4] ss:$8 sps:$4 sm:$0xff]  }
 0x133   : > { %1232 = vmatpush1.bf16.xpose.msra.mxu1 %v3418_v28  ;;  %1033 = vmatprep.subr.bf16.mxu0 %v3423_v29  ;;  %v3510_v28 = vld [vmem:[%s4013_s22 + $0x224] ss:$8 sps:$4 sm:$0xff]   ;;  %v3513_v29 = vld [vmem:[%s4013_s22 + $0x1b4] ss:$8 sps:$4 sm:$0xff]  }
 0x134   : > { %1233 = vmatprep.subr.bf16.mxu1 %v3426_v30  ;;  %v3516_v30 = vld [vmem:[%s4013_s22 + $0x234] ss:$8 sps:$4 sm:$0xff]  }
 0x13a   : > { %1034 = vmatpush1.bf16.xpose.msra.mxu0 %v3421_v31 }
 0x13b   : > { %1234 = vmatpush1.bf16.xpose.msra.mxu1 %v3424_v32  ;;  %1035 = vmatprep.subr.bf16.mxu0 %v3429_v33 }
 0x13c   : > { %1235 = vmatprep.subr.bf16.mxu1 %v3432_v34 }
 0x142   : > { %1036 = vmatpush1.bf16.xpose.msra.mxu0 %v3427_v35  ;;  %v3511_v35 = vld [vmem:[%s4013_s22 + $0x1b0] ss:$8 sps:$4 sm:$0xff]  }
 0x143   : > { %1236 = vmatpush1.bf16.xpose.msra.mxu1 %v3430_v36  ;;  %1037 = vmatprep.subr.bf16.mxu0 %v3435_v37  ;;  %v3514_v36 = vld [vmem:[%s4013_s22 + $0x230] ss:$8 sps:$4 sm:$0xff]  }
 0x144   : > { %1237 = vmatprep.subr.bf16.mxu1 %v3438_v40 }
 0x14a   : > { %1038 = vmatpush1.bf16.xpose.msra.mxu0 %v3433_v41  ;;  %v3519_v41 = vld [vmem:[%s4013_s22 + $0x1c4] ss:$8 sps:$4 sm:$0xff]  }
 0x14b   : > { %1238 = vmatpush1.bf16.xpose.msra.mxu1 %v3436_v42  ;;  %1039 = vmatprep.subr.bf16.mxu0 %v3441_v43  ;;  %v3522_v42 = vld [vmem:[%s4013_s22 + $0x244] ss:$8 sps:$4 sm:$0xff]   ;;  %v3517_v43 = vld [vmem:[%s4013_s22 + $0x1c0] ss:$8 sps:$4 sm:$0xff]  }
 0x14c   : > { %1239 = vmatprep.subr.bf16.mxu1 %v3444_v46  ;;  %v3520_v46 = vld [vmem:[%s4013_s22 + $0x240] ss:$8 sps:$4 sm:$0xff]  }
 0x152   : > { %1040 = vmatpush1.bf16.xpose.msra.mxu0 %v3439_v47  ;;  %v3525_v47 = vld [vmem:[%s4013_s22 + $0x1d4] ss:$8 sps:$4 sm:$0xff]  }
 0x153   : > { %1240 = vmatpush1.bf16.xpose.msra.mxu1 %v3442_v48  ;;  %1345 = vmatprep.subr.bf16.mxu0 %v3447_v49  ;;  %v3528_v48 = vld [vmem:[%s4013_s22 + $0x254] ss:$8 sps:$4 sm:$0xff]   ;;  %v3523_v49 = vld [vmem:[%s4013_s22 + $0x1d0] ss:$8 sps:$4 sm:$0xff]  }
 0x154   : > { %1465 = vmatprep.subr.bf16.mxu1 %v3450_v50  ;;  %v3526_v50 = vld [vmem:[%s4013_s22 + $0x250] ss:$8 sps:$4 sm:$0xff]  }
 0x159   : > { %1058 = vmatmul.mubr.bf16.vlgmr.msra.gmra.mrb[8].mxu0 %v4120_v10 }
 0x15a   : > { %1258 = vmatmul.mubr.bf16.vlgmr.msra.gmra.mrb[8].mxu1 %v4034_v14  ;;  %1346 = vmatpush1.bf16.xpose.msra.mxu0 %v3445_v51  ;;  %v3457_v14 = vld [vmem:[%s4013_s22 + $0xa0] ss:$8 sps:$4 sm:$0xff]   ;;  %v3531_v51 = vld [vmem:[%s4013_s22 + $0x1e4] ss:$8 sps:$4 sm:$0xff]  }
 0x15b   : > { %1466 = vmatpush1.bf16.xpose.msra.mxu1 %v3448_v52  ;;  %1347 = vmatprep.subr.bf16.mxu0 %v3453_v53  ;;  %v3534_v52 = vld [vmem:[%s4013_s22 + $0x264] ss:$8 sps:$4 sm:$0xff]   ;;  %v3529_v53 = vld [vmem:[%s4013_s22 + $0x1e0] ss:$8 sps:$4 sm:$0xff]  }
 0x15c   : > { %1467 = vmatprep.subr.bf16.mxu1 %v3456_v54  ;;  %1377 = vmatprep.mubr.bf16.mxu0 %v4046_v18  ;;  %v3468_v18 = vld [vmem:[%s4013_s22 + $0x134] ss:$8 sps:$4 sm:$0xff]   ;;  %v3532_v54 = vld [vmem:[%s4013_s22 + $0x260] ss:$8 sps:$4 sm:$0xff]  }
 0x15d   : > { %1497 = vmatprep.mubr.bf16.mxu1 %v4081_v44  ;;  %v3463_v44 = vld [vmem:[%s4013_s22 + $0xb0] ss:$8 sps:$4 sm:$0xff]  }
 0x162   : > { %1348 = vmatpush1.bf16.xpose.msra.mxu0 %v3451_v55  ;;  %v3537_v55 = vld [vmem:[%s4013_s22 + $0x1f4] ss:$8 sps:$4 sm:$0xff]  }
 0x163   : > { %1468 = vmatpush1.bf16.xpose.msra.mxu1 %v3454_v56  ;;  %1349 = vmatprep.subr.bf16.mxu0 %v3459_v57  ;;  %v3540_v56 = vld [vmem:[%s4013_s22 + $0x274] ss:$8 sps:$4 sm:$0xff]   ;;  %v3535_v57 = vld [vmem:[%s4013_s22 + $0x1f0] ss:$8 sps:$4 sm:$0xff]  }
 0x164   : > { %1469 = vmatprep.subr.bf16.mxu1 %v3462_v58  ;;  %v3538_v58 = vld [vmem:[%s4013_s22 + $0x270] ss:$8 sps:$4 sm:$0xff]  }
 0x16a   : > { %1350 = vmatpush1.bf16.xpose.msra.mxu0 %v3457_v14 }
 0x16b   : > { %1470 = vmatpush1.bf16.xpose.msra.mxu1 %v3460_v59  ;;  %1351 = vmatprep.subr.bf16.mxu0 %v3465_v60 }
 0x16c   : > { %1471 = vmatprep.subr.bf16.mxu1 %v3468_v18 }
 0x172   : > { %1352 = vmatpush1.bf16.xpose.msra.mxu0 %v3463_v44 }
 0x173   : > { %1472 = vmatpush1.bf16.xpose.msra.mxu1 %v3466_v61  ;;  %1353 = vmatprep.subr.bf16.mxu0 %v3471_v62 }
 0x174   : > { %1473 = vmatprep.subr.bf16.mxu1 %v3474_v63 }
 0x17a   : > { %1354 = vmatpush1.bf16.xpose.msra.mxu0 %v3469_v0 }
 0x17b   : > { %1474 = vmatpush1.bf16.xpose.msra.mxu1 %v3472_v1  ;;  %1355 = vmatprep.subr.bf16.mxu0 %v3477_v2 }
 0x17c   : > { %1475 = vmatprep.subr.bf16.mxu1 %v3480_v3 }
 0x182   : > { %1356 = vmatpush1.bf16.xpose.msra.mxu0 %v3475_v4 }
 0x183   : > { %1476 = vmatpush1.bf16.xpose.msra.mxu1 %v3478_v5  ;;  %1357 = vmatprep.subr.bf16.mxu0 %v3483_v6 }
 0x184   : > { %1477 = vmatprep.subr.bf16.mxu1 %v3486_v7 }
 0x18a   : > { %1358 = vmatpush1.bf16.xpose.msra.mxu0 %v3481_v8 }
 0x18b   : > { %1478 = vmatpush1.bf16.xpose.msra.mxu1 %v3484_v9  ;;  %1359 = vmatprep.subr.bf16.mxu0 %v3489_v11 }
 0x18c   : > { %1479 = vmatprep.subr.bf16.mxu1 %v3492_v12 }
 0x192   : > { %1360 = vmatpush1.bf16.xpose.msra.mxu0 %v3487_v13 }
 0x193   : > { %1480 = vmatpush1.bf16.xpose.msra.mxu1 %v3490_v17  ;;  %1585 = vmatprep.subr.bf16.mxu0 %v3495_v20 }
 0x194   : > { %1705 = vmatprep.subr.bf16.mxu1 %v3498_v21 }
 0x199   : > { %1378 = vmatmul.mubr.bf16.vlgmr.msra.gmra.mrb[12].mxu0 %v4041_v16  ;;  %v3505_v16 = vld [vmem:[%s4013_s22 + $0x1a0] ss:$8 sps:$4 sm:$0xff]  }
 0x19a   : > { %1498 = vmatmul.mubr.bf16.vlgmr.msra.gmra.mrb[12].mxu1 %v4070_v38  ;;  %1586 = vmatpush1.bf16.xpose.msra.mxu0 %v3493_v22  ;;  %v3508_v38 = vld [vmem:[%s4013_s22 + $0x220] ss:$8 sps:$4 sm:$0xff]  }
 0x19b   : > { %1706 = vmatpush1.bf16.xpose.msra.mxu1 %v3496_v23  ;;  %1587 = vmatprep.subr.bf16.mxu0 %v3501_v24 }
 0x19c   : > { %1707 = vmatprep.subr.bf16.mxu1 %v3504_v25  ;;  %1617 = vmatprep.mubr.bf16.mxu0 %v4085_v45 }
 0x19d   : > { %1737 = vmatprep.mubr.bf16.mxu1 %v4128_v19 }
 0x1a2   : > { %1588 = vmatpush1.bf16.xpose.msra.mxu0 %v3499_v26 }
 0x1a3   : > { %1708 = vmatpush1.bf16.xpose.msra.mxu1 %v3502_v27  ;;  %1589 = vmatprep.subr.bf16.mxu0 %v3507_v15 }
 0x1a4   : > { %1709 = vmatprep.subr.bf16.mxu1 %v3510_v28 }
 0x1aa   : > { %1590 = vmatpush1.bf16.xpose.msra.mxu0 %v3505_v16 }
 0x1ab   : > { %1710 = vmatpush1.bf16.xpose.msra.mxu1 %v3508_v38  ;;  %1591 = vmatprep.subr.bf16.mxu0 %v3513_v29 }
 0x1ac   : > { %1711 = vmatprep.subr.bf16.mxu1 %v3516_v30  ;;  %v535_v45 = vpop.f32.mrb[0].mxu0 }
 0x1ad   : > { %v666_v19 = vpop.f32.mrb[0].mxu1  ;;  %1748 = vst [vmem:[%s4217_s29] sm:$0xf] %v535_v45  ;;  %v537_v31 = vpop.f32.mrb[1].mxu0 }
 0x1ae   : > { %1749 = vst [vmem:[%s4217_s29 + $0x4] sm:$0xf] %v666_v19  ;;  %v668_v32 = vpop.f32.mrb[1].mxu1  ;;  %v538_v33 = vpop.f32.mrb[2].mxu0 }
 0x1af   : > { %v669_v34 = vpop.f32.mrb[2].mxu1  ;;  %v539_v37 = vpop.f32.mrb[3].mxu0 }
 0x1b0   : > { %v670_v40 = vpop.f32.mrb[3].mxu1 }
 0x1b2   : > { %1592 = vmatpush1.bf16.xpose.msra.mxu0 %v3511_v35 }
 0x1b3   : > { %1712 = vmatpush1.bf16.xpose.msra.mxu1 %v3514_v36  ;;  %1593 = vmatprep.subr.bf16.mxu0 %v3519_v41 }
 0x1b4   : > { %1713 = vmatprep.subr.bf16.mxu1 %v3522_v42 }
 0x1ba   : > { %1594 = vmatpush1.bf16.xpose.msra.mxu0 %v3517_v43 }
 0x1bb   : > { %1714 = vmatpush1.bf16.xpose.msra.mxu1 %v3520_v46  ;;  %1595 = vmatprep.subr.bf16.mxu0 %v3525_v47 }
 0x1bc   : > { %1715 = vmatprep.subr.bf16.mxu1 %v3528_v48 }
 0x1c2   : > { %1596 = vmatpush1.bf16.xpose.msra.mxu0 %v3523_v49 }
 0x1c3   : > { %1716 = vmatpush1.bf16.xpose.msra.mxu1 %v3526_v50  ;;  %1597 = vmatprep.subr.bf16.mxu0 %v3531_v51 }
 0x1c4   : > { %1717 = vmatprep.subr.bf16.mxu1 %v3534_v52 }
 0x1ca   : > { %1598 = vmatpush1.bf16.xpose.msra.mxu0 %v3529_v53 }
 0x1cb   : > { %1718 = vmatpush1.bf16.xpose.msra.mxu1 %v3532_v54  ;;  %1599 = vmatprep.subr.bf16.mxu0 %v3537_v55 }
 0x1cc   : > { %1719 = vmatprep.subr.bf16.mxu1 %v3540_v56 }
 0x1d2   : > { %1600 = vmatpush1.bf16.xpose.msra.mxu0 %v3535_v57 }
 0x1d3   : > { %1720 = vmatpush1.bf16.xpose.msra.mxu1 %v3538_v58 }
 0x1d9   : > { %1618 = vmatmul.mubr.bf16.vlgmr.msra.gmra.mrb[16].mxu0 %v4073_v39 }
 0x1da   : > { %1738 = vmatmul.mubr.bf16.vlgmr.msra.gmra.mrb[16].mxu1 %v4120_v10 }
 0x1ec   : > { %v797_v14 = vpop.f32.mrb[4].mxu0 }
 0x1ed   : > { %v928_v59 = vpop.f32.mrb[4].mxu1  ;;  %1750 = vst [vmem:[%s4217_s29 + $0x8] sm:$0xf] %v797_v14  ;;  %v799_v60 = vpop.f32.mrb[5].mxu0 }
 0x1ee   : > { %1751 = vst [vmem:[%s4217_s29 + $0xc] sm:$0xf] %v928_v59  ;;  %v930_v18 = vpop.f32.mrb[5].mxu1  ;;  %v800_v44 = vpop.f32.mrb[6].mxu0 }
 0x1ef   : > { %v931_v61 = vpop.f32.mrb[6].mxu1  ;;  %v801_v62 = vpop.f32.mrb[7].mxu0  ;;  %v4253_v18 = vld [vmem:[#allocation10 + $0x10] sm:$0xff] (!%p3024_p0) }
 0x1f0   : > { %v932_v63 = vpop.f32.mrb[7].mxu1  ;;  %3098 = vmatprep.mubr.msk.f32.mxu0 (!%p3024_p0), %vm1822_vm10, %v4253_v18  ;;  %3112 = vmatprep.mubr.msk.f32.mxu1 (!%p3024_p0), %vm1822_vm10, %v4253_v18 }
 0x22c   : > { %v1059_v0 = vpop.f32.mrb[8].mxu0 }
 0x22d   : > { %v1259_v1 = vpop.f32.mrb[8].mxu1  ;;  %1752 = vst [vmem:[%s4217_s29 + $0x10] sm:$0xf] %v1059_v0  ;;  %v1061_v2 = vpop.f32.mrb[9].mxu0 }
 0x22e   : > { %1754 = vst [vmem:[%s1753_s6] sm:$0xf] %v1259_v1  ;;  %v1261_v39 = vpop.f32.mrb[9].mxu1  ;;  %v1062_v3 = vpop.f32.mrb[10].mxu0 }
 0x22f   : > { %v1262_v10 = vpop.f32.mrb[10].mxu1  ;;  %v1063_v4 = vpop.f32.mrb[11].mxu0 }
 0x230   : > { %v1263_v5 = vpop.f32.mrb[11].mxu1 }
 0x234   : > { %v1768_v1 = vld [vmem:[#allocation2] sm:$0x1] (!%p3024_p0)  ;;  %v1769_v5 = vld [vmem:[#allocation2 + $0x4] sm:$0x1] (!%p3024_p0) }
 0x26c   : > { %v1379_v6 = vpop.f32.mrb[12].mxu0 }
 0x26d   : > { %v1499_v7 = vpop.f32.mrb[12].mxu1  ;;  %1755 = vst [vmem:[%s1753_s6 + $0x4] sm:$0xf] %v1379_v6  ;;  %v1381_v8 = vpop.f32.mrb[13].mxu0  ;;  %v1770_v6 = vld [vmem:[#allocation2 + $0x8] sm:$0x1] (!%p3024_p0) }
 0x26e   : > { %1756 = vst [vmem:[%s1753_s6 + $0x8] sm:$0xf] %v1499_v7  ;;  %v1501_v9 = vpop.f32.mrb[13].mxu1  ;;  %v1382_v11 = vpop.f32.mrb[14].mxu0 }
 0x26f   : > { %v1502_v12 = vpop.f32.mrb[14].mxu1  ;;  %v1383_v13 = vpop.f32.mrb[15].mxu0 }
 0x270   : > { %v1503_v17 = vpop.f32.mrb[15].mxu1  ;;  %v1771_v12 = vld [vmem:[#allocation2 + $0xc] sm:$0x1] (!%p3024_p0)  ;;  %v1772_v13 = vld [vmem:[#allocation2 + $0x10] sm:$0x1] (!%p3024_p0) }
 0x2aa   : > { %1762 = sbr.rel (%p3024_p0) target bundleno = 955 (0x3bb), region = 56 }
 0x2ac   : > { %v1619_v20 = vpop.f32.mrb[16].mxu0 }
 0x2ad   : > { %v1739_v21 = vpop.f32.mrb[16].mxu1  ;;  %1757 = vst [vmem:[%s1753_s6 + $0xc] sm:$0xf] %v1619_v20  ;;  %v1621_v22 = vpop.f32.mrb[17].mxu0  ;;  %v1773_v20 = vld [vmem:[#allocation2 + $0x14] sm:$0x1] (!%p3024_p0) }
 0x2ae   : > { %1758 = vst [vmem:[%s1753_s6 + $0x10] sm:$0xf] %v1739_v21  ;;  %v1741_v23 = vpop.f32.mrb[17].mxu1  ;;  %v1622_v24 = vpop.f32.mrb[18].mxu0  ;;  %v1774_v21 = vld [vmem:[#allocation2 + $0x18] sm:$0x1] (!%p3024_p0) }
 0x2af   : > { %v1742_v25 = vpop.f32.mrb[18].mxu1  ;;  %v1623_v26 = vpop.f32.mrb[19].mxu0  ;;  %v1917_v22 = vrot.slane (!%p3024_p0), %v1769_v5, 7 }
 0x2b0   : > { %v1743_v27 = vpop.f32.mrb[19].mxu1  ;;  %v4272_v25 = vld [vmem:[#allocation10 + $0x18] sm:$0xff] (!%p3024_p0)  ;;  %v1775_v26 = vld [vmem:[#allocation2 + $0x1c] sm:$0x1] (!%p3024_p0) }
 0x2b1   : > { %v1777_v27 = vld [vmem:[#allocation2 + $0x24] sm:$0x1] }
 0x2b5   : > { %v1779_v15 = vld [vmem:[#allocation3 + $0x4] sm:$0x1]  ;;  %v1780_v28 = vld [vmem:[#allocation3 + $0x8] sm:$0x1]  ;;  %v1781_v16 = vld [vmem:[#allocation3 + $0xc] sm:$0x1] }
 0x2b6   : > { %v1782_v38 = vld [vmem:[#allocation3 + $0x10] sm:$0x1]  ;;  %v1778_v29 = vld [vmem:[#allocation3] sm:$0x1]  ;;  %v1783_v30 = vld [vmem:[#allocation3 + $0x14] sm:$0x1] }
 0x2b7   : > { %v1784_v45 = vld [vmem:[#allocation3 + $0x18] sm:$0x1]  ;;  %v1785_v19 = vld [vmem:[#allocation3 + $0x1c] sm:$0x1]  ;;  %v1798_v31 = vrot.slane %v1779_v15, 7  ;;  %v1801_v32 = vrot.slane %v1780_v28, 6 }
 0x2b8   : > { %v1786_v33 = vld [vmem:[#allocation3 + $0x20] sm:$0x1]  ;;  %v1787_v34 = vld [vmem:[#allocation3 + $0x24] sm:$0x1]  ;;  %v1804_v35 = vrot.slane %v1781_v16, 5  ;;  %v1807_v36 = vrot.slane %v1782_v38, 4  ;;  %v1918_v16 = vsel %vm1799_vm0, %v1917_v22, %v1768_v1 }
 0x2b9   : > { %v1800_v37 = vsel %vm1799_vm0, %v1798_v31, %v1778_v29  ;;  %v1810_v40 = vrot.slane %v1783_v30, 3  ;;  %v1813_v41 = vrot.slane %v1784_v45, 2  ;;  %v2029_v42 = vld [vmem:[#allocation3 + $0x1] sm:$0x1]  ;;  %v2030_v43 = vld [vmem:[#allocation3 + $0x5] sm:$0x1] }
 0x2ba   : > { %v1803_v46 = vsel %vm1802_vm1, %v1801_v32, %v1800_v37  ;;  %v1816_v47 = vrot.slane %v1785_v19, 1  ;;  %v2031_v48 = vld [vmem:[#allocation3 + $0x9] sm:$0x1]  ;;  %v1819_v50 = vrot.slane %v1787_v34, 7  ;;  %v2032_v51 = vld [vmem:[#allocation3 + $0xd] sm:$0x1] }
 0x2bb   : > { %v1806_v49 = vsel %vm1805_vm2, %v1804_v35, %v1803_v46  ;;  %v2033_v53 = vld [vmem:[#allocation3 + $0x11] sm:$0x1]  ;;  %v2034_v54 = vld [vmem:[#allocation3 + $0x15] sm:$0x1]  ;;  %v2049_v55 = vrot.slane %v2030_v43, 7  ;;  %v2051_v56 = vrot.slane %v2031_v48, 6 }
 0x2bc   : > { %v1809_v52 = vsel %vm1808_vm3, %v1807_v36, %v1806_v49  ;;  %v1820_v58 = vsel %vm1799_vm0, %v1819_v50, %v1786_v33  ;;  %v2035_v14 = vld [vmem:[#allocation3 + $0x19] sm:$0x1]  ;;  %v2036_v59 = vld [vmem:[#allocation3 + $0x1d] sm:$0x1]  ;;  %v2037_v60 = vld [vmem:[#allocation3 + $0x21] sm:$0x1] }
 0x2bd   : > { %v1812_v57 = vsel %vm1811_vm4, %v1810_v40, %v1809_v52  ;;  %v2038_v61 = vld [vmem:[#allocation3 + $0x25] sm:$0x1]  ;;  %v2050_v62 = vsel %vm1799_vm0, %v2049_v55, %v2029_v42  ;;  %v2053_v63 = vrot.slane %v2032_v51, 5  ;;  %v2055_v0 = vrot.slane %v2033_v53, 4  ;;  %v1776_v28 = vld [vmem:[#allocation2 + $0x20] sm:$0x1] }
 0x2be   : > { %v1815_v44 = vsel %vm1814_vm5, %v1813_v41, %v1812_v57  ;;  %v2052_v3 = vsel %vm1802_vm1, %v2051_v56, %v2050_v62  ;;  %v2057_v10 = vrot.slane %v2034_v54, 3  ;;  %v2059_v4 = vrot.slane %v2035_v14, 2  ;;  %v2020_v30 = vld [vmem:[#allocation2 + $0x5] sm:$0x1]  ;;  %v2019_v33 = vld [vmem:[#allocation2 + $0x1] sm:$0x1] }
 0x2bf   : > { %v1818_v2 = vsel %vm1817_vm6, %v1816_v47, %v1815_v44  ;;  %v2054_v8 = vsel %vm1805_vm2, %v2053_v63, %v2052_v3  ;;  %v2061_v9 = vrot.slane %v2036_v59, 1  ;;  %v2063_v11 = vrot.slane %v2038_v61, 7  ;;  %v2021_v34 = vld [vmem:[#allocation2 + $0x9] sm:$0x1]  ;;  %v4281_v35 = vld [vmem:[#allocation10] sm:$0xff] }
 0x2c0   : > { %v3150_v7 = vpack.c.bf16 %v1820_v58, %v1818_v2  ;;  %v2056_v17 = vsel %vm1808_vm3, %v2055_v0, %v2054_v8  ;;  %v1919_v38 = vrot.slane %v1770_v6, 6  ;;  %v1921_v29 = vrot.slane %v1771_v12, 5  ;;  %v2022_v42 = vld [vmem:[#allocation2 + $0xd] sm:$0x1]  ;;  %v2023_v43 = vld [vmem:[#allocation2 + $0x11] sm:$0x1] }
 0x2c1   : > { %v2058_v23 = vsel %vm1811_vm4, %v2057_v10, %v2056_v17  ;;  %v2064_v24 = vsel %vm1799_vm0, %v2063_v11, %v2037_v60  ;;  %v1923_v19 = vrot.slane %v1772_v13, 4  ;;  %v1925_v31 = vrot.slane %v1773_v20, 3  ;;  %v2024_v47 = vld [vmem:[#allocation2 + $0x15] sm:$0x1]  ;;  %v2025_v48 = vld [vmem:[#allocation2 + $0x19] sm:$0x1] }
 0x2c2   : > { %3152 = vmatprep.subr.msk.bf16.mxu0 %vm4259_vm9, %v3150_v7  ;;  %v2060_v15 = vsel %vm1814_vm5, %v2059_v4, %v2058_v23  ;;  %v1927_v32 = vrot.slane %v1774_v21, 2  ;;  %v1920_v37 = vsel %vm1802_vm1, %v1919_v38, %v1918_v16  ;;  %v1929_v40 = vrot.slane %v1775_v26, 1  ;;  %v2026_v49 = vld [vmem:[#allocation2 + $0x1d] sm:$0x1]  ;;  %v2027_v52 = vld [vmem:[#allocation2 + $0x21] sm:$0x1] }
 0x2c3   : > { %3155 = vmatpush3.bf16.msk.msra.mxu0 %vm4259_vm9, %v3150_v7  ;;  %v2062_v45 = vsel %vm1817_vm6, %v2061_v9, %v2060_v15  ;;  %v1931_v41 = vrot.slane %v1777_v27, 7  ;;  %v1922_v46 = vsel %vm1805_vm2, %v1921_v29, %v1920_v37  ;;  %v2028_v53 = vld [vmem:[#allocation2 + $0x25] sm:$0x1]  ;;  %v2153_v54 = vrot.slane %v2020_v30, 7  ;;  %v2260_v59 = vld [vmem:[#allocation3 + $0x2] sm:$0x1] }
 0x2c4   : > { %v3162_v36 = vpack.c.bf16 %v2064_v24, %v2062_v45  ;;  %v1924_v50 = vsel %vm1808_vm3, %v1923_v19, %v1922_v46  ;;  %v2155_v55 = vrot.slane %v2021_v34, 6  ;;  %v2157_v57 = vrot.slane %v2022_v42, 5  ;;  %v2261_v63 = vld [vmem:[#allocation3 + $0x6] sm:$0x1]  ;;  %v2262_v0 = vld [vmem:[#allocation3 + $0xa] sm:$0x1] }
 0x2c5   : > { %v1932_v51 = vsel %vm1799_vm0, %v1931_v41, %v1776_v28  ;;  %v1926_v56 = vsel %vm1811_vm4, %v1925_v31, %v1924_v50  ;;  %v2159_v58 = vrot.slane %v2023_v43, 4  ;;  %v2161_v14 = vrot.slane %v2024_v47, 3  ;;  %v2263_v10 = vld [vmem:[#allocation3 + $0xe] sm:$0x1]  ;;  %v2264_v4 = vld [vmem:[#allocation3 + $0x12] sm:$0x1] }
 0x2c6   : > { %3099 = vmatmul.mubr.msk.f32.vlgmr.msra.gmra.mrb[0].mxu0 %vm1822_vm10, %v4272_v25  ;;  %3164 = vmatprep.subr.msk.bf16.mxu1 %vm4259_vm9, %v3162_v36  ;;  %v1928_v60 = vsel %vm1814_vm5, %v1927_v32, %v1926_v56  ;;  %v2154_v44 = vsel %vm1799_vm0, %v2153_v54, %v2019_v33  ;;  %v2163_v61 = vrot.slane %v2025_v48, 2  ;;  %v2165_v62 = vrot.slane %v2026_v49, 1  ;;  %v2265_v8 = vld [vmem:[#allocation3 + $0x16] sm:$0x1]  ;;  %v2266_v9 = vld [vmem:[#allocation3 + $0x1a] sm:$0x1] }
 0x2c7   : > { %3105 = vmatprep.mubr.msk.f32.mxu0 %vm1822_vm10, %v4281_v35  ;;  %3167 = vmatpush3.bf16.msk.msra.mxu1 %vm4259_vm9, %v3162_v36  ;;  %v1930_v1 = vsel %vm1817_vm6, %v1929_v40, %v1928_v60  ;;  %v2156_v2 = vsel %vm1802_vm1, %v2155_v55, %v2154_v44  ;;  %v2167_v3 = vrot.slane %v2028_v53, 7  ;;  %v2280_v5 = vrot.slane %v2261_v63, 7  ;;  %v2267_v11 = vld [vmem:[#allocation3 + $0x1e] sm:$0x1]  ;;  %v2268_v17 = vld [vmem:[#allocation3 + $0x22] sm:$0x1] }
 0x2c8   : > { %v3156_v6 = vpack.c.bf16 %v1932_v51, %v1930_v1  ;;  %v2158_v7 = vsel %vm1805_vm2, %v2157_v57, %v2156_v2  ;;  %v2269_v20 = vld [vmem:[#allocation3 + $0x26] sm:$0x1]  ;;  %v2282_v22 = vrot.slane %v2262_v0, 6  ;;  %v4311_v24 = vld [vmem:[#allocation10 + $0x8] sm:$0xff]  ;;  %v2284_v26 = vrot.slane %v2263_v10, 5 }
 0x2c9   : > { %v2160_v12 = vsel %vm1808_vm3, %v2159_v58, %v2158_v7  ;;  %v2168_v13 = vsel %vm1799_vm0, %v2167_v3, %v2027_v52  ;;  %v2281_v21 = vsel %vm1799_vm0, %v2280_v5, %v2260_v59  ;;  %v2286_v27 = vrot.slane %v2264_v4, 4  ;;  %v2491_v28 = vld [vmem:[#allocation3 + $0x3] sm:$0x1]  ;;  %v2492_v45 = vld [vmem:[#allocation3 + $0x7] sm:$0x1] }
 0x2ca   : > { %3113 = vmatmul.mubr.msk.f32.vlgmr.msra.gmra.mrb[0].mxu1 %vm1822_vm10, %v4272_v25  ;;  %3158 = vmatprep.subr.msk.bf16.mxu0 %vm4259_vm9, %v3156_v6  ;;  %v2162_v23 = vsel %vm1811_vm4, %v2161_v14, %v2160_v12  ;;  %v2288_v15 = vrot.slane %v2265_v8, 3  ;;  %v2283_v38 = vsel %vm1802_vm1, %v2282_v22, %v2281_v21  ;;  %v2290_v29 = vrot.slane %v2266_v9, 2  ;;  %v2493_v19 = vld [vmem:[#allocation3 + $0xb] sm:$0x1]  ;;  %v2494_v34 = vld [vmem:[#allocation3 + $0xf] sm:$0x1] }
 0x2cb   : > { %3119 = vmatprep.mubr.msk.f32.mxu1 %vm1822_vm10, %v4281_v35  ;;  %v2164_v16 = vsel %vm1814_vm5, %v2163_v61, %v2162_v23  ;;  %3161 = vmatpush3.bf16.msk.msra.mxu0 %vm4259_vm9, %v3156_v6  ;;  %v2292_v30 = vrot.slane %v2267_v11, 1  ;;  %v2285_v32 = vsel %vm1805_vm2, %v2284_v26, %v2283_v38  ;;  %v2294_v33 = vrot.slane %v2269_v20, 7  ;;  %v2495_v36 = vld [vmem:[#allocation3 + $0x13] sm:$0x1]  ;;  %v2496_v42 = vld [vmem:[#allocation3 + $0x17] sm:$0x1] }
 0x2cc   : > { %v2166_v31 = vsel %vm1817_vm6, %v2165_v62, %v2164_v16  ;;  %v2511_v37 = vrot.slane %v2492_v45, 7  ;;  %v2287_v41 = vsel %vm1808_vm3, %v2286_v27, %v2285_v32  ;;  %v2497_v43 = vld [vmem:[#allocation3 + $0x1b] sm:$0x1]  ;;  %v2498_v46 = vld [vmem:[#allocation3 + $0x1f] sm:$0x1]  ;;  %v2513_v52 = vrot.slane %v2493_v19, 6 }
 0x2cd   : > { %v3168_v40 = vpack.c.bf16 %v2168_v13, %v2166_v31  ;;  %v2289_v47 = vsel %vm1811_vm4, %v2288_v15, %v2287_v41  ;;  %v2295_v48 = vsel %vm1799_vm0, %v2294_v33, %v2268_v17  ;;  %v2499_v49 = vld [vmem:[#allocation3 + $0x23] sm:$0x1]  ;;  %v2500_v50 = vld [vmem:[#allocation3 + $0x27] sm:$0x1]  ;;  %v2515_v54 = vrot.slane %v2494_v34, 5 }
 0x2ce   : > { %3106 = vmatmul.mubr.msk.f32.vlgmr.msra.gmra.mrb[0].mxu0 %vm1822_vm10, %v4311_v24  ;;  %v2512_v51 = vsel %vm1799_vm0, %v2511_v37, %v2491_v28  ;;  %v2291_v53 = vsel %vm1814_vm5, %v2290_v29, %v2289_v47  ;;  %v2517_v55 = vrot.slane %v2495_v36, 4  ;;  %v2519_v56 = vrot.slane %v2496_v42, 3  ;;  %v2250_v57 = vld [vmem:[#allocation2 + $0x2] sm:$0x1]  ;;  %v2251_v44 = vld [vmem:[#allocation2 + $0x6] sm:$0x1] }
 0x2cf   : > { %3170 = vmatprep.subr.msk.bf16.mxu1 %vm4259_vm9, %v3168_v40  ;;  %3126 = vmatprep.mubr.msk.f32.mxu0 %vm1822_vm10, %v4253_v18  ;;  %v2293_v58 = vsel %vm1817_vm6, %v2292_v30, %v2291_v53  ;;  %v2514_v14 = vsel %vm1802_vm1, %v2513_v52, %v2512_v51  ;;  %v2521_v59 = vrot.slane %v2497_v43, 2  ;;  %v2523_v60 = vrot.slane %v2498_v46, 1  ;;  %v2252_v61 = vld [vmem:[#allocation2 + $0xa] sm:$0x1]  ;;  %v2253_v1 = vld [vmem:[#allocation2 + $0xe] sm:$0x1] }
 0x2d0   : > { %3173 = vmatpush3.bf16.msk.msra.mxu1 %vm4259_vm9, %v3168_v40  ;;  %v3174_v62 = vpack.c.bf16 %v2295_v48, %v2293_v58  ;;  %v2516_v63 = vsel %vm1805_vm2, %v2515_v54, %v2514_v14  ;;  %v2525_v0 = vrot.slane %v2500_v50, 7  ;;  %v2254_v2 = vld [vmem:[#allocation2 + $0x12] sm:$0x1]  ;;  %v2384_v3 = vrot.slane %v2251_v44, 7  ;;  %v2255_v4 = vld [vmem:[#allocation2 + $0x16] sm:$0x1] }
 0x2d1   : > { %v2518_v10 = vsel %vm1808_vm3, %v2517_v55, %v2516_v63  ;;  %v2256_v5 = vld [vmem:[#allocation2 + $0x1a] sm:$0x1]  ;;  %v2257_v6 = vld [vmem:[#allocation2 + $0x1e] sm:$0x1]  ;;  %v2258_v9 = vld [vmem:[#allocation2 + $0x22] sm:$0x1] }
 0x2d2   : > { %3176 = vmatprep.subr.msk.bf16.mxu0 %vm4259_vm9, %v3174_v62  ;;  %v2520_v7 = vsel %vm1811_vm4, %v2519_v56, %v2518_v10  ;;  %v2526_v8 = vsel %vm1799_vm0, %v2525_v0, %v2499_v49  ;;  %v2259_v11 = vld [vmem:[#allocation2 + $0x26] sm:$0x1]  ;;  %v2385_v12 = vsel %vm1799_vm0, %v2384_v3, %v2250_v57  ;;  %v2386_v13 = vrot.slane %v2252_v61, 6  ;;  %v2481_v23 = vld [vmem:[#allocation2 + $0x3] sm:$0x1] }
 0x2d3   : > { %3120 = vmatmul.mubr.msk.f32.vlgmr.msra.gmra.mrb[0].mxu1 %vm1822_vm10, %v4311_v24  ;;  %v2522_v17 = vsel %vm1814_vm5, %v2521_v59, %v2520_v7  ;;  %3179 = vmatpush3.bf16.msk.msra.mxu0 %vm4259_vm9, %v3174_v62  ;;  %v2388_v20 = vrot.slane %v2253_v1, 5  ;;  %v2390_v21 = vrot.slane %v2254_v2, 4  ;;  %v2392_v22 = vrot.slane %v2255_v4, 3  ;;  %v2482_v16 = vld [vmem:[#allocation2 + $0x7] sm:$0x1] }
 0x2d4   : > { %3140 = vmatprep.mubr.msk.f32.mxu1 %vm1822_vm10, %v4253_v18  ;;  %v2524_v26 = vsel %vm1817_vm6, %v2523_v60, %v2522_v17  ;;  %v2387_v27 = vsel %vm1802_vm1, %v2386_v13, %v2385_v12  ;;  %v2394_v15 = vrot.slane %v2256_v5, 2  ;;  %v2396_v28 = vrot.slane %v2257_v6, 1  ;;  %v2483_v38 = vld [vmem:[#allocation2 + $0xb] sm:$0x1]  ;;  %v2484_v19 = vld [vmem:[#allocation2 + $0xf] sm:$0x1] }
 0x2d5   : > { %v3186_v29 = vpack.c.bf16 %v2526_v8, %v2524_v26  ;;  %v2389_v30 = vsel %vm1805_vm2, %v2388_v20, %v2387_v27  ;;  %v2398_v45 = vrot.slane %v2259_v11, 7  ;;  %v2485_v31 = vld [vmem:[#allocation2 + $0x13] sm:$0x1]  ;;  %v2615_v32 = vrot.slane %v2482_v16, 7  ;;  %v2486_v33 = vld [vmem:[#allocation2 + $0x17] sm:$0x1] }
 0x2d6   : > { %3127 = vmatmul.mubr.msk.f32.vlgmr.msra.gmra.mrb[2].mxu0 %vm1822_vm10, %v4272_v25  ;;  %v2391_v18 = vsel %vm1808_vm3, %v2390_v21, %v2389_v30  ;;  %v2487_v34 = vld [vmem:[#allocation2 + $0x1b] sm:$0x1]  ;;  %v2488_v40 = vld [vmem:[#allocation2 + $0x1f] sm:$0x1]  ;;  %v2490_v41 = vld [vmem:[#allocation2 + $0x27] sm:$0x1] }
 0x2d7   : > { %3188 = vmatprep.subr.msk.bf16.mxu1 %vm4259_vm9, %v3186_v29  ;;  %v2393_v36 = vsel %vm1811_vm4, %v2392_v22, %v2391_v18  ;;  %v2399_v37 = vsel %vm1799_vm0, %v2398_v45, %v2258_v9  ;;  %v2616_v42 = vsel %vm1799_vm0, %v2615_v32, %v2481_v23  ;;  %v2617_v43 = vrot.slane %v2483_v38, 6  ;;  %3133 = vmatprep.mubr.msk.f32.mxu0 %vm1822_vm10, %v4281_v35  ;;  %v2489_v51 = vld [vmem:[#allocation2 + $0x23] sm:$0x1] }
 0x2d8   : > { %3191 = vmatpush3.bf16.msk.msra.mxu1 %vm4259_vm9, %v3186_v29  ;;  %v2395_v46 = vsel %vm1814_vm5, %v2394_v15, %v2393_v36  ;;  %v2619_v47 = vrot.slane %v2484_v19, 5  ;;  %v2621_v48 = vrot.slane %v2485_v31, 4  ;;  %v2623_v49 = vrot.slane %v2486_v33, 3 }
 0x2d9   : > { %v2397_v50 = vsel %vm1817_vm6, %v2396_v28, %v2395_v46  ;;  %v2618_v52 = vsel %vm1802_vm1, %v2617_v43, %v2616_v42  ;;  %v2625_v53 = vrot.slane %v2487_v34, 2  ;;  %v2627_v56 = vrot.slane %v2488_v40, 1 }
 0x2da   : > { %v3180_v54 = vpack.c.bf16 %v2399_v37, %v2397_v50  ;;  %v2620_v55 = vsel %vm1805_vm2, %v2619_v47, %v2618_v52  ;;  %v2629_v57 = vrot.slane %v2490_v41, 7 }
 0x2db   : > { %3141 = vmatmul.mubr.msk.f32.vlgmr.msra.gmra.mrb[2].mxu1 %vm1822_vm10, %v4272_v25  ;;  %v2622_v58 = vsel %vm1808_vm3, %v2621_v48, %v2620_v55 }
 0x2dc   : > { %3182 = vmatprep.subr.msk.bf16.mxu0 %vm4259_vm9, %v3180_v54  ;;  %v2624_v14 = vsel %vm1811_vm4, %v2623_v49, %v2622_v58  ;;  %v2630_v59 = vsel %vm1799_vm0, %v2629_v57, %v2489_v51  ;;  %3147 = vmatprep.mubr.msk.f32.mxu1 %vm1822_vm10, %v4281_v35 }
 0x2dd   : > { %v2626_v60 = vsel %vm1814_vm5, %v2625_v53, %v2624_v14  ;;  %3185 = vmatpush3.bf16.msk.msra.mxu0 %vm4259_vm9, %v3180_v54 }
 0x2de   : > { %v2628_v44 = vsel %vm1817_vm6, %v2627_v56, %v2626_v60 }
 0x2df   : > { %v3192_v25 = vpack.c.bf16 %v2630_v59, %v2628_v44 }
 0x2e0   : > { %3134 = vmatmul.mubr.msk.f32.vlgmr.msra.gmra.mrb[2].mxu0 %vm1822_vm10, %v4311_v24 }
 0x2e1   : > { %3194 = vmatprep.subr.msk.bf16.mxu1 %vm4259_vm9, %v3192_v25 }
 0x2e2   : > { %3197 = vmatpush3.bf16.msk.msra.mxu1 %vm4259_vm9, %v3192_v25 }
 0x2e5   : > { %3148 = vmatmul.mubr.msk.f32.vlgmr.msra.gmra.mrb[2].mxu1 %vm1822_vm10, %v4311_v24 }
 0x3a1   : > { %v3107_v35 = vpop.f32.mrb[0].mxu0 }
 0x3a2   : > { %2018 = vst [vmem:[#allocation12 + $0x8] sm:$0xff] %v3107_v35  ;;  %v2008_v61 = vpop.f32.mrb[1].mxu0 }
 0x3a3   : > { %2017 = vst [vmem:[#allocation12] sm:$0xff] %v2008_v61 }
 0x3a6   : > { %v3121_v62 = vpop.f32.mrb[0].mxu1 }
 0x3a7   : > { %2249 = vst [vmem:[#allocation12 + $0x18] sm:$0xff] %v3121_v62  ;;  %v2238_v63 = vpop.f32.mrb[1].mxu1 }
 0x3a8   : > { %2248 = vst [vmem:[#allocation12 + $0x10] sm:$0xff] %v2238_v63 }
 0x3b3   : > { %v3135_v0 = vpop.f32.mrb[2].mxu0 }
 0x3b4   : > { %2480 = vst [vmem:[#allocation12 + $0x28] sm:$0xff] %v3135_v0  ;;  %v2469_v1 = vpop.f32.mrb[3].mxu0 }
 0x3b5   : > { %2479 = vst [vmem:[#allocation12 + $0x20] sm:$0xff] %v2469_v1 }
 0x3b8   : > { %v3149_v2 = vpop.f32.mrb[2].mxu1 }
 0x3b9   : > { %2711 = vst [vmem:[#allocation12 + $0x38] sm:$0xff] %v3149_v2  ;;  %v2700_v3 = vpop.f32.mrb[3].mxu1 }
 0x3ba   : > { %2710 = vst [vmem:[#allocation12 + $0x30] sm:$0xff] %v2700_v3 }
 0x3bb PF: > { %p3242_p1 = scmp.eq.s32.totalorder %s3884_s13, 1  ;;  %s3758_s18 = smov [#allocation12]  }
 0x3bc   : > { %s2722_s8 = sshll.u32 %s3758_s18, 4  ;;  %s2723_s8 = int_to_ptr.vmem [resolvable:$true] %s2722_s8 }
 0x3bd   : > { %s3659_s23 = scalar_lea.vmem %s2723_s8, 1024  ;;  %p3666_p3 = scmp.lt.s32.totalorder %s2723_s8, %s2723_s8 }
 0x3be   : > { %p3660_p4 = scmp.ne.s32.totalorder %s2723_s8, %s3659_s23  ;;  %p3667_p5 = scmp.lt.s32.totalorder %s3659_s23, %s3659_s23 }
 0x3c0   : > { %p3661_p6 = pnand %p3660_p4, %p3242_p1  ;;  %p3668_p7 = por %p3667_p5, %p3666_p3 }
 0x3c2   : > { %p3662_p13 = pneg %p3661_p6 }
 0x3c4   : > { %p3669_p11 = pnand %p3668_p7, %p3662_p13 }
 0x3c6   : > { %3672 = shalt.err (!%p3669_p11)
}
 0x3c7   : > { %s3673_s26 = scalar_lea.hbm %s4433_s4, 1024 }
 0x3c8   : > { %p3674_p12 = scmp.ne.s32.totalorder %s4433_s4, %s3673_s26  ;;  %p3679_p2 = scmp.lt.u32.totalorder %s3673_s26, %s4433_s4 }
 0x3ca   : > { %p3675_p8 = pnand %p3674_p12, %p3242_p1 }
 0x3cc   : > { %p3676_p9 = pneg %p3675_p8 }
 0x3ce   : > { %p3681_p10 = pnand %p3679_p2, %p3676_p9 }
 0x3d0   : > { %3684 = shalt.err (!%p3681_p10)
}
 0x3d1   : > { %s3759_s21 = smov 128   ;;  %s3760_s0 = smov 8  }
 0x3d2   : > { %3222 = dma.vmem_to_hbm [thread:$0]  (%p3242_p1), %s2723_s8, 1024, %s4433_s4, [#allocation6], %s3759_s21, %s3759_s21, %s3760_s0  }
 0x3d3   : > { %3722 = dma.done.wait (%p3242_p1), [#allocation6], 1024  }
 0x3d4   : > { %3724 = vsyncadd (%p3242_p1), [#allocation6], 4294966272 }
 0x3d5 PF: > { %s22_s20 = sadd.s32 1, %s3747_s20   ;;  %s4473_s25 = sld [smem:[#allocation18_spill]] }
 0x3d6   : > { %p19_p0 = scmp.ge.s32.totalorder %s22_s20, 4   ;;  %s4474_s10 = sld [smem:[#allocation17_spill]] }
 0x3d7   : > { %s4475_s15 = smov %s3731_s16  ;;  %s4476_s16 = smov %s3735_s17 }
 0x3d8   : > { %s4478_s18 = smov %s3743_s19  ;;  %21 = sbr.rel (!%p19_p0) target bundleno = 12 (0xc), region = 112 }
 0x3db   : > { %s4477_s17 = smov %s4473_s25 }
 0x3dc   : > { %s4479_s19 = smov %s4474_s10 }
 0x3df   :  { %2738 = vsyncpa [#allocation5], 1 }
 0x3e0   :  { %2740 = vsyncpa [#allocation5 + $0x1], 1 }
 0x3e1   :  { %2741 = vsyncpa [#allocation8], 1 }
 0x3e2   :  { %2743 = vsyncpa [#allocation8 + $0x1], 1 }
 0x3e3   :  { %2744 = vsyncpa [#allocation11], 1 }
 0x3e4   :  { %2745 = vsyncpa [#allocation6], 1 }
 0x3e5   :  { %2747 = vsyncpa [#allocation6 + $0x1], 1 }

</bundles_post_ra>
